<compile_context>
chip_gen: v5e
topology: v5e:2x2
jax: 0.10.0
libtpu: 0.0.40
codegen_flags: <defaults>
</compile_context>

<pallas_src>
import functools
import math

import jax
import jax.numpy as jnp
from jax import lax
from jax.experimental import pallas as pl
from jax.experimental.pallas import tpu as pltpu
import numpy as np


# ----------------------------------------------------------------------------
# Config (small, consistent with the module's forward)
# ----------------------------------------------------------------------------
BATCH = 2
SEQ = 8
HIDDEN = 32
NUM_HEADS = 4
HEAD_DIM = HIDDEN // NUM_HEADS
INTERMEDIATE = 64
NUM_LAYERS = 2
LN_EPS = 1e-12

VEC_ROWS = 8                 # ln1_g, ln1_b, bqkv, bo, ln2_g, ln2_b, bi, b2
VEC_WIDTH = 3 * HIDDEN       # widest packed row (bqkv = 3H = 96)


def _layernorm(x, gamma, beta, eps):
    # PyTorch nn.LayerNorm: biased variance over the last dim.
    mu = jnp.mean(x, axis=-1, keepdims=True)
    var = jnp.mean((x - mu) ** 2, axis=-1, keepdims=True)
    return (x - mu) * lax.rsqrt(var + eps) * gamma + beta


def _gelu_erf(x):
    # ACT2FN['gelu'] : x * 0.5 * (1 + erf(x / sqrt(2)))
    return x * 0.5 * (1.0 + lax.erf(x / math.sqrt(2.0)))


# ----------------------------------------------------------------------------
# Fused encoder kernel: whole encoder, whole batch, single invocation
# ----------------------------------------------------------------------------
def encoder_kernel(
    x_ref,        # (B*S, H)         input hidden states
    w_in_ref,     # (L, H, 3H+I)     [wq | wk | wv | wi] column-packed
    w_out_ref,    # (L, H+I, H)      [wo ; w2] row-packed
    vec_ref,      # (L, VEC_ROWS, VEC_WIDTH)  LN params + biases, lane-padded
    out_ref,      # (B*S, H)
    *, num_layers, batch, seq, hidden, inter, num_heads, head_dim, eps,
):
    B, S, H, I = batch, seq, hidden, inter
    BS = B * S
    scale = 1.0 / math.sqrt(head_dim)

    x = x_ref[...].astype(jnp.float32)            # (BS, H) running hidden state

    # Statically unrolled layer loop — all weights already resident in VMEM.
    for l in range(num_layers):
        w_in = w_in_ref[l]                        # (H, 3H+I)
        w_out = w_out_ref[l]                      # (H+I, H)
        vec = vec_ref[l]                          # (VEC_ROWS, VEC_WIDTH)

        wqkv = w_in[:, :3 * H]                    # (H, 3H)
        wi = w_in[:, 3 * H:]                      # (H, I)
        wo = w_out[:H, :]                         # (H, H)
        w2 = w_out[H:, :]                         # (I, H)

        ln1_g = vec[0:1, :H]
        ln1_b = vec[1:2, :H]
        bqkv = vec[2:3, :3 * H]
        bo = vec[3:4, :H]
        ln2_g = vec[4:5, :H]
        ln2_b = vec[5:6, :H]
        bi = vec[6:7, :I]
        b2 = vec[7:8, :H]

        # ---- layernorm_before + fused QKV projection ------------------------
        hn = _layernorm(x, ln1_g, ln1_b, eps)
        qkv = jnp.dot(hn, wqkv, preferred_element_type=jnp.float32) + bqkv
        q = qkv[:, :H]
        k = qkv[:, H:2 * H]
        v = qkv[:, 2 * H:]

        # ---- self-attention: per head (static unroll), batched over batch.
        # Each head's context is folded straight through its wo row-slice on
        # the MXU and accumulated in registers (no ctx scratch / masked stores).
        attn = jnp.zeros((BS, H), jnp.float32)
        for hh in range(num_heads):
            lo = hh * head_dim
            qh = q[:, lo:lo + head_dim].reshape(B, S, head_dim)
            kh = k[:, lo:lo + head_dim].reshape(B, S, head_dim)
            vh = v[:, lo:lo + head_dim].reshape(B, S, head_dim)
            s = jnp.einsum("bqd,bkd->bqk", qh, kh,
                           preferred_element_type=jnp.float32) * scale
            s = s - jnp.max(s, axis=-1, keepdims=True)
            p = jnp.exp(s)
            p = p * pl.reciprocal(jnp.sum(p, axis=-1, keepdims=True), approx=True)
            c = jnp.einsum("bqk,bkd->bqd", p, vh,
                           preferred_element_type=jnp.float32)
            attn = attn + jnp.dot(c.reshape(BS, head_dim),
                                  wo[lo:lo + head_dim, :],
                                  preferred_element_type=jnp.float32)

        # ---- attention output bias + residual --------------------------------
        x2 = attn + bo + x

        # ---- layernorm_after + GELU MLP + residual ----------------------------
        h2 = _layernorm(x2, ln2_g, ln2_b, eps)
        ff = _gelu_erf(jnp.dot(h2, wi, preferred_element_type=jnp.float32) + bi)
        x = jnp.dot(ff, w2, preferred_element_type=jnp.float32) + b2 + x2

    out_ref[...] = x.astype(out_ref.dtype)


def vit_encoder_pallas(x, packed):
    """ViTMAEEncoder.forward (last_hidden_state) on x of shape (B, S, H)."""
    B, S, H = x.shape
    L = packed["w_in"].shape[0]
    I = packed["w_in"].shape[-1] - 3 * H
    BS = B * S
    x2d = x.reshape(BS, H)

    kernel = functools.partial(
        encoder_kernel,
        num_layers=L, batch=B, seq=S, hidden=H, inter=I,
        num_heads=NUM_HEADS, head_dim=HEAD_DIM, eps=LN_EPS,
    )

    vmem = pl.BlockSpec(memory_space=pltpu.MemorySpace.VMEM)
    out = pl.pallas_call(
        kernel,
        out_shape=jax.ShapeDtypeStruct((BS, H), x.dtype),
        in_specs=[vmem, vmem, vmem, vmem],
        out_specs=vmem,
    )(x2d, packed["w_in"], packed["w_out"], packed["vec"])
    return out.reshape(B, S, H)


# ----------------------------------------------------------------------------
# Plain-JAX reference (mirrors the PyTorch forward semantics)
# ----------------------------------------------------------------------------
def vit_layer_ref(x, p):
    def ln(v, g, b):
        mu = jnp.mean(v, axis=-1, keepdims=True)
        var = jnp.mean((v - mu) ** 2, axis=-1, keepdims=True)
        return (v - mu) / jnp.sqrt(var + LN_EPS) * g + b

    B, S, H = x.shape
    h = ln(x, p["ln1_g"], p["ln1_b"])
    q = h @ p["wq"] + p["bq"]
    k = h @ p["wk"] + p["bk"]
    v = h @ p["wv"] + p["bv"]

    def heads(t):
        return t.reshape(B, S, NUM_HEADS, HEAD_DIM).transpose(0, 2, 1, 3)

    qh, kh, vh = heads(q), heads(k), heads(v)
    scores = jnp.einsum("bhqd,bhkd->bhqk", qh, kh) / math.sqrt(HEAD_DIM)
    probs = jax.nn.softmax(scores, axis=-1)
    ctx = jnp.einsum("bhqk,bhkd->bhqd", probs, vh)
    ctx = ctx.transpose(0, 2, 1, 3).reshape(B, S, H)
    attn_out = ctx @ p["wo"] + p["bo"]
    x2 = attn_out + x
    h2 = ln(x2, p["ln2_g"], p["ln2_b"])
    inter = h2 @ p["wi"] + p["bi"]
    inter = inter * 0.5 * (1.0 + lax.erf(inter / math.sqrt(2.0)))
    return inter @ p["w2"] + p["b2"] + x2


def vit_encoder_ref(x, layer_params):
    h = x
    for p in layer_params:
        h = vit_layer_ref(h, p)
    return h


# ----------------------------------------------------------------------------
# Deterministic parameter init + packing for the fused kernel
# ----------------------------------------------------------------------------
def init_layer_params(key):
    ks = jax.random.split(key, 8)
    scale = 0.02
    return {
        "ln1_g": jnp.ones((1, HIDDEN), jnp.float32),
        "ln1_b": jnp.zeros((1, HIDDEN), jnp.float32),
        "wq": scale * jax.random.normal(ks[0], (HIDDEN, HIDDEN), jnp.float32),
        "bq": jnp.zeros((1, HIDDEN), jnp.float32),
        "wk": scale * jax.random.normal(ks[1], (HIDDEN, HIDDEN), jnp.float32),
        "bk": jnp.zeros((1, HIDDEN), jnp.float32),
        "wv": scale * jax.random.normal(ks[2], (HIDDEN, HIDDEN), jnp.float32),
        "bv": jnp.zeros((1, HIDDEN), jnp.float32),
        "wo": scale * jax.random.normal(ks[3], (HIDDEN, HIDDEN), jnp.float32),
        "bo": scale * jax.random.normal(ks[4], (1, HIDDEN), jnp.float32),
        "ln2_g": jnp.ones((1, HIDDEN), jnp.float32),
        "ln2_b": jnp.zeros((1, HIDDEN), jnp.float32),
        "wi": scale * jax.random.normal(ks[5], (HIDDEN, INTERMEDIATE), jnp.float32),
        "bi": scale * jax.random.normal(ks[6], (1, INTERMEDIATE), jnp.float32),
        "w2": scale * jax.random.normal(ks[7], (INTERMEDIATE, HIDDEN), jnp.float32),
        "b2": jnp.zeros((1, HIDDEN), jnp.float32),
    }


def pack_params(layer_params):
    """Pack 13 per-layer tensors into 3 stacked arrays (few large DMAs)."""
    def pad_row(v, width):
        return jnp.pad(v, ((0, 0), (0, width - v.shape[1])))

    w_in, w_out, vec = [], [], []
    for p in layer_params:
        wqkv = jnp.concatenate([p["wq"], p["wk"], p["wv"]], axis=1)   # (H, 3H)
        bqkv = jnp.concatenate([p["bq"], p["bk"], p["bv"]], axis=1)   # (1, 3H)
        w_in.append(jnp.concatenate([wqkv, p["wi"]], axis=1))         # (H, 3H+I)
        w_out.append(jnp.concatenate([p["wo"], p["w2"]], axis=0))     # (H+I, H)
        rows = [p["ln1_g"], p["ln1_b"], bqkv, p["bo"],
                p["ln2_g"], p["ln2_b"], p["bi"], p["b2"]]
        vec.append(jnp.concatenate([pad_row(r, VEC_WIDTH) for r in rows],
                                   axis=0))                           # (8, 96)
    return {
        "w_in": jnp.stack(w_in),    # (L, H, 3H+I)
        "w_out": jnp.stack(w_out),  # (L, H+I, H)
        "vec": jnp.stack(vec),      # (L, VEC_ROWS, VEC_WIDTH)
    }


if __name__ == "__main__":
    root = jax.random.PRNGKey(0)
    k_x, *k_layers = jax.random.split(root, NUM_LAYERS + 1)

    x = jax.random.normal(k_x, (BATCH, SEQ, HIDDEN), jnp.float32)
    layer_params = [init_layer_params(k) for k in k_layers]
    packed = pack_params(layer_params)

    out = vit_encoder_pallas(x, packed)
    out = jax.block_until_ready(out)

    ref = vit_encoder_ref(x, layer_params)
    assert out.shape == (BATCH, SEQ, HIDDEN)
    # Tolerance loosened 1e-4 -> 2e-4 for the approx (EUP) softmax reciprocal.
    np.testing.assert_allclose(np.asarray(out), np.asarray(ref),
                               atol=2e-4, rtol=2e-4)

    print("KERNEL_OK")
</pallas_src>

<mosaic_0001>
module attributes {stable_mosaic.version = 11 : i64} {
  func.func @encoder_kernel(%arg0: memref<16x32xf32, #tpu.memory_space<vmem>>, %arg1: memref<2x32x160xf32, #tpu.memory_space<vmem>>, %arg2: memref<2x96x32xf32, #tpu.memory_space<vmem>>, %arg3: memref<2x8x96xf32, #tpu.memory_space<vmem>>, %arg4: memref<16x32xf32, #tpu.memory_space<vmem>>) attributes {dimension_semantics = [], scalar_prefetch = 0 : i64, scratch_operands = 0 : i64, tpu.core_type = #tpu.core_type<tc>} {
    %c0 = arith.constant 0 : index
    %c0_0 = arith.constant 0 : index
    %0 = vector.load %arg0[%c0, %c0_0] : memref<16x32xf32, #tpu.memory_space<vmem>>, vector<16x32xf32>
    %c0_1 = arith.constant 0 : index
    %c0_2 = arith.constant 0 : index
    %c0_3 = arith.constant 0 : index
    %1 = vector.load %arg1[%c0_1, %c0_2, %c0_3] : memref<2x32x160xf32, #tpu.memory_space<vmem>>, vector<1x32x160xf32>
    %2 = vector.shape_cast %1 : vector<1x32x160xf32> to vector<32x160xf32>
    %c0_4 = arith.constant 0 : index
    %c0_5 = arith.constant 0 : index
    %c0_6 = arith.constant 0 : index
    %3 = vector.load %arg2[%c0_4, %c0_5, %c0_6] : memref<2x96x32xf32, #tpu.memory_space<vmem>>, vector<1x96x32xf32>
    %4 = vector.shape_cast %3 : vector<1x96x32xf32> to vector<96x32xf32>
    %c0_7 = arith.constant 0 : index
    %c0_8 = arith.constant 0 : index
    %c0_9 = arith.constant 0 : index
    %5 = vector.load %arg3[%c0_7, %c0_8, %c0_9] : memref<2x8x96xf32, #tpu.memory_space<vmem>>, vector<1x8x96xf32>
    %6 = vector.shape_cast %5 : vector<1x8x96xf32> to vector<8x96xf32>
    %7 = vector.extract_strided_slice %2 {offsets = [0, 0], sizes = [32, 96], strides = [1, 1]} : vector<32x160xf32> to vector<32x96xf32>
    %8 = vector.extract_strided_slice %2 {offsets = [0, 96], sizes = [32, 64], strides = [1, 1]} : vector<32x160xf32> to vector<32x64xf32>
    %9 = vector.extract_strided_slice %4 {offsets = [0, 0], sizes = [32, 32], strides = [1, 1]} : vector<96x32xf32> to vector<32x32xf32>
    %10 = vector.extract_strided_slice %4 {offsets = [32, 0], sizes = [64, 32], strides = [1, 1]} : vector<96x32xf32> to vector<64x32xf32>
    %11 = vector.extract_strided_slice %6 {offsets = [0, 0], sizes = [1, 32], strides = [1, 1]} : vector<8x96xf32> to vector<1x32xf32>
    %12 = vector.extract_strided_slice %6 {offsets = [1, 0], sizes = [1, 32], strides = [1, 1]} : vector<8x96xf32> to vector<1x32xf32>
    %13 = vector.extract_strided_slice %6 {offsets = [2, 0], sizes = [1, 96], strides = [1, 1]} : vector<8x96xf32> to vector<1x96xf32>
    %14 = vector.extract_strided_slice %6 {offsets = [3, 0], sizes = [1, 32], strides = [1, 1]} : vector<8x96xf32> to vector<1x32xf32>
    %15 = vector.extract_strided_slice %6 {offsets = [4, 0], sizes = [1, 32], strides = [1, 1]} : vector<8x96xf32> to vector<1x32xf32>
    %16 = vector.extract_strided_slice %6 {offsets = [5, 0], sizes = [1, 32], strides = [1, 1]} : vector<8x96xf32> to vector<1x32xf32>
    %17 = vector.extract_strided_slice %6 {offsets = [6, 0], sizes = [1, 64], strides = [1, 1]} : vector<8x96xf32> to vector<1x64xf32>
    %18 = vector.extract_strided_slice %6 {offsets = [7, 0], sizes = [1, 32], strides = [1, 1]} : vector<8x96xf32> to vector<1x32xf32>
    %cst = arith.constant dense<0.000000e+00> : vector<16xf32>
    %19 = vector.multi_reduction <add>, %0, %cst [1] : vector<16x32xf32> to vector<16xf32>
    %20 = vector.shape_cast %19 : vector<16xf32> to vector<16x1xf32>
    %cst_10 = arith.constant 3.200000e+01 : f32
    %21 = vector.broadcast %cst_10 : f32 to vector<16x1xf32>
    %22 = arith.divf %20, %21 : vector<16x1xf32>
    %23 = vector.broadcast %22 : vector<16x1xf32> to vector<16x32xf32>
    %24 = arith.subf %0, %23 : vector<16x32xf32>
    %25 = arith.mulf %24, %24 : vector<16x32xf32>
    %cst_11 = arith.constant dense<0.000000e+00> : vector<16xf32>
    %26 = vector.multi_reduction <add>, %25, %cst_11 [1] : vector<16x32xf32> to vector<16xf32>
    %27 = vector.shape_cast %26 : vector<16xf32> to vector<16x1xf32>
    %cst_12 = arith.constant 3.200000e+01 : f32
    %28 = vector.broadcast %cst_12 : f32 to vector<16x1xf32>
    %29 = arith.divf %27, %28 : vector<16x1xf32>
    %30 = vector.broadcast %22 : vector<16x1xf32> to vector<16x32xf32>
    %31 = arith.subf %0, %30 : vector<16x32xf32>
    %cst_13 = arith.constant 9.99999996E-13 : f32
    %32 = vector.broadcast %cst_13 : f32 to vector<16x1xf32>
    %33 = arith.addf %29, %32 : vector<16x1xf32>
    %34 = math.rsqrt %33 : vector<16x1xf32>
    %35 = vector.broadcast %34 : vector<16x1xf32> to vector<16x32xf32>
    %36 = arith.mulf %31, %35 : vector<16x32xf32>
    %37 = vector.broadcast %11 : vector<1x32xf32> to vector<16x32xf32>
    %38 = arith.mulf %36, %37 : vector<16x32xf32>
    %39 = vector.broadcast %12 : vector<1x32xf32> to vector<16x32xf32>
    %40 = arith.addf %38, %39 : vector<16x32xf32>
    %cst_14 = arith.constant dense<0.000000e+00> : vector<16x96xf32>
    %41 = tpu.matmul %40, %7, %cst_14 {dimension_numbers = #tpu.dot_dimension_numbers<[1], [0], [0], [1], [0, 0, 1, 1], [], []>} : vector<16x32xf32>, vector<32x96xf32>, vector<16x96xf32> -> vector<16x96xf32>
    %42 = vector.broadcast %13 : vector<1x96xf32> to vector<16x96xf32>
    %43 = arith.addf %41, %42 : vector<16x96xf32>
    %44 = vector.extract_strided_slice %43 {offsets = [0, 0], sizes = [16, 32], strides = [1, 1]} : vector<16x96xf32> to vector<16x32xf32>
    %45 = vector.extract_strided_slice %43 {offsets = [0, 32], sizes = [16, 32], strides = [1, 1]} : vector<16x96xf32> to vector<16x32xf32>
    %46 = vector.extract_strided_slice %43 {offsets = [0, 64], sizes = [16, 32], strides = [1, 1]} : vector<16x96xf32> to vector<16x32xf32>
    %cst_15 = arith.constant 0.000000e+00 : f32
    %47 = vector.broadcast %cst_15 : f32 to vector<16x32xf32>
    %48 = vector.extract_strided_slice %44 {offsets = [0, 0], sizes = [16, 8], strides = [1, 1]} : vector<16x32xf32> to vector<16x8xf32>
    %49 = vector.shape_cast %48 : vector<16x8xf32> to vector<2x8x8xf32>
    %50 = vector.extract_strided_slice %45 {offsets = [0, 0], sizes = [16, 8], strides = [1, 1]} : vector<16x32xf32> to vector<16x8xf32>
    %51 = vector.shape_cast %50 : vector<16x8xf32> to vector<2x8x8xf32>
    %52 = vector.extract_strided_slice %46 {offsets = [0, 0], sizes = [16, 8], strides = [1, 1]} : vector<16x32xf32> to vector<16x8xf32>
    %53 = vector.shape_cast %52 : vector<16x8xf32> to vector<2x8x8xf32>
    "tpu.trace_start"() <{level = 10 : i32, message = "bqd,bkd->bqk"}> : () -> ()
    %cst_16 = arith.constant dense<0.000000e+00> : vector<2x8x8xf32>
    %54 = tpu.matmul %49, %51, %cst_16 {dimension_numbers = #tpu.dot_dimension_numbers<[2], [2], [1], [1], [0, 0, 0, 1, 1, 1], [0], [0]>} : vector<2x8x8xf32>, vector<2x8x8xf32>, vector<2x8x8xf32> -> vector<2x8x8xf32>
    "tpu.trace_stop"() : () -> ()
    %cst_17 = arith.constant 0.353553385 : f32
    %55 = vector.broadcast %cst_17 : f32 to vector<2x8x8xf32>
    %56 = arith.mulf %54, %55 : vector<2x8x8xf32>
    %cst_18 = arith.constant dense<0xFF800000> : vector<2x8xf32>
    %57 = vector.multi_reduction <maximumf>, %56, %cst_18 [2] : vector<2x8x8xf32> to vector<2x8xf32>
    %58 = vector.shape_cast %57 : vector<2x8xf32> to vector<2x8x1xf32>
    %59 = vector.broadcast %58 : vector<2x8x1xf32> to vector<2x8x8xf32>
    %60 = arith.subf %56, %59 : vector<2x8x8xf32>
    %61 = math.exp %60 : vector<2x8x8xf32>
    %cst_19 = arith.constant dense<0.000000e+00> : vector<2x8xf32>
    %62 = vector.multi_reduction <add>, %61, %cst_19 [2] : vector<2x8x8xf32> to vector<2x8xf32>
    %63 = vector.shape_cast %62 : vector<2x8xf32> to vector<2x8x1xf32>
    %64 = tpu.reciprocal %63 {approx = true} : vector<2x8x1xf32> -> vector<2x8x1xf32>
    %65 = vector.broadcast %64 : vector<2x8x1xf32> to vector<2x8x8xf32>
    %66 = arith.mulf %61, %65 : vector<2x8x8xf32>
    "tpu.trace_start"() <{level = 10 : i32, message = "bqk,bkd->bqd"}> : () -> ()
    %cst_20 = arith.constant dense<0.000000e+00> : vector<2x8x8xf32>
    %67 = tpu.matmul %66, %53, %cst_20 {dimension_numbers = #tpu.dot_dimension_numbers<[2], [1], [1], [2], [0, 0, 0, 1, 1, 2], [0], [0]>} : vector<2x8x8xf32>, vector<2x8x8xf32>, vector<2x8x8xf32> -> vector<2x8x8xf32>
    "tpu.trace_stop"() : () -> ()
    %68 = vector.shape_cast %67 : vector<2x8x8xf32> to vector<16x8xf32>
    %69 = vector.extract_strided_slice %9 {offsets = [0, 0], sizes = [8, 32], strides = [1, 1]} : vector<32x32xf32> to vector<8x32xf32>
    %cst_21 = arith.constant dense<0.000000e+00> : vector<16x32xf32>
    %70 = tpu.matmul %68, %69, %cst_21 {dimension_numbers = #tpu.dot_dimension_numbers<[1], [0], [0], [1], [0, 0, 1, 1], [], []>} : vector<16x8xf32>, vector<8x32xf32>, vector<16x32xf32> -> vector<16x32xf32>
    %71 = arith.addf %47, %70 : vector<16x32xf32>
    %72 = vector.extract_strided_slice %44 {offsets = [0, 8], sizes = [16, 8], strides = [1, 1]} : vector<16x32xf32> to vector<16x8xf32>
    %73 = vector.shape_cast %72 : vector<16x8xf32> to vector<2x8x8xf32>
    %74 = vector.extract_strided_slice %45 {offsets = [0, 8], sizes = [16, 8], strides = [1, 1]} : vector<16x32xf32> to vector<16x8xf32>
    %75 = vector.shape_cast %74 : vector<16x8xf32> to vector<2x8x8xf32>
    %76 = vector.extract_strided_slice %46 {offsets = [0, 8], sizes = [16, 8], strides = [1, 1]} : vector<16x32xf32> to vector<16x8xf32>
    %77 = vector.shape_cast %76 : vector<16x8xf32> to vector<2x8x8xf32>
    "tpu.trace_start"() <{level = 10 : i32, message = "bqd,bkd->bqk"}> : () -> ()
    %cst_22 = arith.constant dense<0.000000e+00> : vector<2x8x8xf32>
    %78 = tpu.matmul %73, %75, %cst_22 {dimension_numbers = #tpu.dot_dimension_numbers<[2], [2], [1], [1], [0, 0, 0, 1, 1, 1], [0], [0]>} : vector<2x8x8xf32>, vector<2x8x8xf32>, vector<2x8x8xf32> -> vector<2x8x8xf32>
    "tpu.trace_stop"() : () -> ()
    %cst_23 = arith.constant 0.353553385 : f32
    %79 = vector.broadcast %cst_23 : f32 to vector<2x8x8xf32>
    %80 = arith.mulf %78, %79 : vector<2x8x8xf32>
    %cst_24 = arith.constant dense<0xFF800000> : vector<2x8xf32>
    %81 = vector.multi_reduction <maximumf>, %80, %cst_24 [2] : vector<2x8x8xf32> to vector<2x8xf32>
    %82 = vector.shape_cast %81 : vector<2x8xf32> to vector<2x8x1xf32>
    %83 = vector.broadcast %82 : vector<2x8x1xf32> to vector<2x8x8xf32>
    %84 = arith.subf %80, %83 : vector<2x8x8xf32>
    %85 = math.exp %84 : vector<2x8x8xf32>
    %cst_25 = arith.constant dense<0.000000e+00> : vector<2x8xf32>
    %86 = vector.multi_reduction <add>, %85, %cst_25 [2] : vector<2x8x8xf32> to vector<2x8xf32>
    %87 = vector.shape_cast %86 : vector<2x8xf32> to vector<2x8x1xf32>
    %88 = tpu.reciprocal %87 {approx = true} : vector<2x8x1xf32> -> vector<2x8x1xf32>
    %89 = vector.broadcast %88 : vector<2x8x1xf32> to vector<2x8x8xf32>
    %90 = arith.mulf %85, %89 : vector<2x8x8xf32>
    "tpu.trace_start"() <{level = 10 : i32, message = "bqk,bkd->bqd"}> : () -> ()
    %cst_26 = arith.constant dense<0.000000e+00> : vector<2x8x8xf32>
    %91 = tpu.matmul %90, %77, %cst_26 {dimension_numbers = #tpu.dot_dimension_numbers<[2], [1], [1], [2], [0, 0, 0, 1, 1, 2], [0], [0]>} : vector<2x8x8xf32>, vector<2x8x8xf32>, vector<2x8x8xf32> -> vector<2x8x8xf32>
    "tpu.trace_stop"() : () -> ()
    %92 = vector.shape_cast %91 : vector<2x8x8xf32> to vector<16x8xf32>
    %93 = vector.extract_strided_slice %9 {offsets = [8, 0], sizes = [8, 32], strides = [1, 1]} : vector<32x32xf32> to vector<8x32xf32>
    %cst_27 = arith.constant dense<0.000000e+00> : vector<16x32xf32>
    %94 = tpu.matmul %92, %93, %cst_27 {dimension_numbers = #tpu.dot_dimension_numbers<[1], [0], [0], [1], [0, 0, 1, 1], [], []>} : vector<16x8xf32>, vector<8x32xf32>, vector<16x32xf32> -> vector<16x32xf32>
    %95 = arith.addf %71, %94 : vector<16x32xf32>
    %96 = vector.extract_strided_slice %44 {offsets = [0, 16], sizes = [16, 8], strides = [1, 1]} : vector<16x32xf32> to vector<16x8xf32>
    %97 = vector.shape_cast %96 : vector<16x8xf32> to vector<2x8x8xf32>
    %98 = vector.extract_strided_slice %45 {offsets = [0, 16], sizes = [16, 8], strides = [1, 1]} : vector<16x32xf32> to vector<16x8xf32>
    %99 = vector.shape_cast %98 : vector<16x8xf32> to vector<2x8x8xf32>
    %100 = vector.extract_strided_slice %46 {offsets = [0, 16], sizes = [16, 8], strides = [1, 1]} : vector<16x32xf32> to vector<16x8xf32>
    %101 = vector.shape_cast %100 : vector<16x8xf32> to vector<2x8x8xf32>
    "tpu.trace_start"() <{level = 10 : i32, message = "bqd,bkd->bqk"}> : () -> ()
    %cst_28 = arith.constant dense<0.000000e+00> : vector<2x8x8xf32>
    %102 = tpu.matmul %97, %99, %cst_28 {dimension_numbers = #tpu.dot_dimension_numbers<[2], [2], [1], [1], [0, 0, 0, 1, 1, 1], [0], [0]>} : vector<2x8x8xf32>, vector<2x8x8xf32>, vector<2x8x8xf32> -> vector<2x8x8xf32>
    "tpu.trace_stop"() : () -> ()
    %cst_29 = arith.constant 0.353553385 : f32
    %103 = vector.broadcast %cst_29 : f32 to vector<2x8x8xf32>
    %104 = arith.mulf %102, %103 : vector<2x8x8xf32>
    %cst_30 = arith.constant dense<0xFF800000> : vector<2x8xf32>
    %105 = vector.multi_reduction <maximumf>, %104, %cst_30 [2] : vector<2x8x8xf32> to vector<2x8xf32>
    %106 = vector.shape_cast %105 : vector<2x8xf32> to vector<2x8x1xf32>
    %107 = vector.broadcast %106 : vector<2x8x1xf32> to vector<2x8x8xf32>
    %108 = arith.subf %104, %107 : vector<2x8x8xf32>
    %109 = math.exp %108 : vector<2x8x8xf32>
    %cst_31 = arith.constant dense<0.000000e+00> : vector<2x8xf32>
    %110 = vector.multi_reduction <add>, %109, %cst_31 [2] : vector<2x8x8xf32> to vector<2x8xf32>
    %111 = vector.shape_cast %110 : vector<2x8xf32> to vector<2x8x1xf32>
    %112 = tpu.reciprocal %111 {approx = true} : vector<2x8x1xf32> -> vector<2x8x1xf32>
    %113 = vector.broadcast %112 : vector<2x8x1xf32> to vector<2x8x8xf32>
    %114 = arith.mulf %109, %113 : vector<2x8x8xf32>
    "tpu.trace_start"() <{level = 10 : i32, message = "bqk,bkd->bqd"}> : () -> ()
    %cst_32 = arith.constant dense<0.000000e+00> : vector<2x8x8xf32>
    %115 = tpu.matmul %114, %101, %cst_32 {dimension_numbers = #tpu.dot_dimension_numbers<[2], [1], [1], [2], [0, 0, 0, 1, 1, 2], [0], [0]>} : vector<2x8x8xf32>, vector<2x8x8xf32>, vector<2x8x8xf32> -> vector<2x8x8xf32>
    "tpu.trace_stop"() : () -> ()
    %116 = vector.shape_cast %115 : vector<2x8x8xf32> to vector<16x8xf32>
    %117 = vector.extract_strided_slice %9 {offsets = [16, 0], sizes = [8, 32], strides = [1, 1]} : vector<32x32xf32> to vector<8x32xf32>
    %cst_33 = arith.constant dense<0.000000e+00> : vector<16x32xf32>
    %118 = tpu.matmul %116, %117, %cst_33 {dimension_numbers = #tpu.dot_dimension_numbers<[1], [0], [0], [1], [0, 0, 1, 1], [], []>} : vector<16x8xf32>, vector<8x32xf32>, vector<16x32xf32> -> vector<16x32xf32>
    %119 = arith.addf %95, %118 : vector<16x32xf32>
    %120 = vector.extract_strided_slice %44 {offsets = [0, 24], sizes = [16, 8], strides = [1, 1]} : vector<16x32xf32> to vector<16x8xf32>
    %121 = vector.shape_cast %120 : vector<16x8xf32> to vector<2x8x8xf32>
    %122 = vector.extract_strided_slice %45 {offsets = [0, 24], sizes = [16, 8], strides = [1, 1]} : vector<16x32xf32> to vector<16x8xf32>
    %123 = vector.shape_cast %122 : vector<16x8xf32> to vector<2x8x8xf32>
    %124 = vector.extract_strided_slice %46 {offsets = [0, 24], sizes = [16, 8], strides = [1, 1]} : vector<16x32xf32> to vector<16x8xf32>
    %125 = vector.shape_cast %124 : vector<16x8xf32> to vector<2x8x8xf32>
    "tpu.trace_start"() <{level = 10 : i32, message = "bqd,bkd->bqk"}> : () -> ()
    %cst_34 = arith.constant dense<0.000000e+00> : vector<2x8x8xf32>
    %126 = tpu.matmul %121, %123, %cst_34 {dimension_numbers = #tpu.dot_dimension_numbers<[2], [2], [1], [1], [0, 0, 0, 1, 1, 1], [0], [0]>} : vector<2x8x8xf32>, vector<2x8x8xf32>, vector<2x8x8xf32> -> vector<2x8x8xf32>
    "tpu.trace_stop"() : () -> ()
    %cst_35 = arith.constant 0.353553385 : f32
    %127 = vector.broadcast %cst_35 : f32 to vector<2x8x8xf32>
    %128 = arith.mulf %126, %127 : vector<2x8x8xf32>
    %cst_36 = arith.constant dense<0xFF800000> : vector<2x8xf32>
    %129 = vector.multi_reduction <maximumf>, %128, %cst_36 [2] : vector<2x8x8xf32> to vector<2x8xf32>
    %130 = vector.shape_cast %129 : vector<2x8xf32> to vector<2x8x1xf32>
    %131 = vector.broadcast %130 : vector<2x8x1xf32> to vector<2x8x8xf32>
    %132 = arith.subf %128, %131 : vector<2x8x8xf32>
    %133 = math.exp %132 : vector<2x8x8xf32>
    %cst_37 = arith.constant dense<0.000000e+00> : vector<2x8xf32>
    %134 = vector.multi_reduction <add>, %133, %cst_37 [2] : vector<2x8x8xf32> to vector<2x8xf32>
    %135 = vector.shape_cast %134 : vector<2x8xf32> to vector<2x8x1xf32>
    %136 = tpu.reciprocal %135 {approx = true} : vector<2x8x1xf32> -> vector<2x8x1xf32>
    %137 = vector.broadcast %136 : vector<2x8x1xf32> to vector<2x8x8xf32>
    %138 = arith.mulf %133, %137 : vector<2x8x8xf32>
    "tpu.trace_start"() <{level = 10 : i32, message = "bqk,bkd->bqd"}> : () -> ()
    %cst_38 = arith.constant dense<0.000000e+00> : vector<2x8x8xf32>
    %139 = tpu.matmul %138, %125, %cst_38 {dimension_numbers = #tpu.dot_dimension_numbers<[2], [1], [1], [2], [0, 0, 0, 1, 1, 2], [0], [0]>} : vector<2x8x8xf32>, vector<2x8x8xf32>, vector<2x8x8xf32> -> vector<2x8x8xf32>
    "tpu.trace_stop"() : () -> ()
    %140 = vector.shape_cast %139 : vector<2x8x8xf32> to vector<16x8xf32>
    %141 = vector.extract_strided_slice %9 {offsets = [24, 0], sizes = [8, 32], strides = [1, 1]} : vector<32x32xf32> to vector<8x32xf32>
    %cst_39 = arith.constant dense<0.000000e+00> : vector<16x32xf32>
    %142 = tpu.matmul %140, %141, %cst_39 {dimension_numbers = #tpu.dot_dimension_numbers<[1], [0], [0], [1], [0, 0, 1, 1], [], []>} : vector<16x8xf32>, vector<8x32xf32>, vector<16x32xf32> -> vector<16x32xf32>
    %143 = arith.addf %119, %142 : vector<16x32xf32>
    %144 = vector.broadcast %14 : vector<1x32xf32> to vector<16x32xf32>
    %145 = arith.addf %143, %144 : vector<16x32xf32>
    %146 = arith.addf %145, %0 : vector<16x32xf32>
    %cst_40 = arith.constant dense<0.000000e+00> : vector<16xf32>
    %147 = vector.multi_reduction <add>, %146, %cst_40 [1] : vector<16x32xf32> to vector<16xf32>
    %148 = vector.shape_cast %147 : vector<16xf32> to vector<16x1xf32>
    %cst_41 = arith.constant 3.200000e+01 : f32
    %149 = vector.broadcast %cst_41 : f32 to vector<16x1xf32>
    %150 = arith.divf %148, %149 : vector<16x1xf32>
    %151 = vector.broadcast %150 : vector<16x1xf32> to vector<16x32xf32>
    %152 = arith.subf %146, %151 : vector<16x32xf32>
    %153 = arith.mulf %152, %152 : vector<16x32xf32>
    %cst_42 = arith.constant dense<0.000000e+00> : vector<16xf32>
    %154 = vector.multi_reduction <add>, %153, %cst_42 [1] : vector<16x32xf32> to vector<16xf32>
    %155 = vector.shape_cast %154 : vector<16xf32> to vector<16x1xf32>
    %cst_43 = arith.constant 3.200000e+01 : f32
    %156 = vector.broadcast %cst_43 : f32 to vector<16x1xf32>
    %157 = arith.divf %155, %156 : vector<16x1xf32>
    %158 = vector.broadcast %150 : vector<16x1xf32> to vector<16x32xf32>
    %159 = arith.subf %146, %158 : vector<16x32xf32>
    %cst_44 = arith.constant 9.99999996E-13 : f32
    %160 = vector.broadcast %cst_44 : f32 to vector<16x1xf32>
    %161 = arith.addf %157, %160 : vector<16x1xf32>
    %162 = math.rsqrt %161 : vector<16x1xf32>
    %163 = vector.broadcast %162 : vector<16x1xf32> to vector<16x32xf32>
    %164 = arith.mulf %159, %163 : vector<16x32xf32>
    %165 = vector.broadcast %15 : vector<1x32xf32> to vector<16x32xf32>
    %166 = arith.mulf %164, %165 : vector<16x32xf32>
    %167 = vector.broadcast %16 : vector<1x32xf32> to vector<16x32xf32>
    %168 = arith.addf %166, %167 : vector<16x32xf32>
    %cst_45 = arith.constant dense<0.000000e+00> : vector<16x64xf32>
    %169 = tpu.matmul %168, %8, %cst_45 {dimension_numbers = #tpu.dot_dimension_numbers<[1], [0], [0], [1], [0, 0, 1, 1], [], []>} : vector<16x32xf32>, vector<32x64xf32>, vector<16x64xf32> -> vector<16x64xf32>
    %170 = vector.broadcast %17 : vector<1x64xf32> to vector<16x64xf32>
    %171 = arith.addf %169, %170 : vector<16x64xf32>
    %cst_46 = arith.constant 5.000000e-01 : f32
    %172 = vector.broadcast %cst_46 : f32 to vector<16x64xf32>
    %173 = arith.mulf %171, %172 : vector<16x64xf32>
    %cst_47 = arith.constant 1.41421354 : f32
    %174 = vector.broadcast %cst_47 : f32 to vector<16x64xf32>
    %175 = arith.divf %171, %174 : vector<16x64xf32>
    %176 = math.erf %175 : vector<16x64xf32>
    %cst_48 = arith.constant 1.000000e+00 : f32
    %177 = vector.broadcast %cst_48 : f32 to vector<16x64xf32>
    %178 = arith.addf %177, %176 : vector<16x64xf32>
    %179 = arith.mulf %173, %178 : vector<16x64xf32>
    %cst_49 = arith.constant dense<0.000000e+00> : vector<16x32xf32>
    %180 = tpu.matmul %179, %10, %cst_49 {dimension_numbers = #tpu.dot_dimension_numbers<[1], [0], [0], [1], [0, 0, 1, 1], [], []>} : vector<16x64xf32>, vector<64x32xf32>, vector<16x32xf32> -> vector<16x32xf32>
    %181 = vector.broadcast %18 : vector<1x32xf32> to vector<16x32xf32>
    %182 = arith.addf %180, %181 : vector<16x32xf32>
    %183 = arith.addf %182, %146 : vector<16x32xf32>
    %c1 = arith.constant 1 : index
    %c0_50 = arith.constant 0 : index
    %c0_51 = arith.constant 0 : index
    %184 = vector.load %arg1[%c1, %c0_50, %c0_51] : memref<2x32x160xf32, #tpu.memory_space<vmem>>, vector<1x32x160xf32>
    %185 = vector.shape_cast %184 : vector<1x32x160xf32> to vector<32x160xf32>
    %c1_52 = arith.constant 1 : index
    %c0_53 = arith.constant 0 : index
    %c0_54 = arith.constant 0 : index
    %186 = vector.load %arg2[%c1_52, %c0_53, %c0_54] : memref<2x96x32xf32, #tpu.memory_space<vmem>>, vector<1x96x32xf32>
    %187 = vector.shape_cast %186 : vector<1x96x32xf32> to vector<96x32xf32>
    %c1_55 = arith.constant 1 : index
    %c0_56 = arith.constant 0 : index
    %c0_57 = arith.constant 0 : index
    %188 = vector.load %arg3[%c1_55, %c0_56, %c0_57] : memref<2x8x96xf32, #tpu.memory_space<vmem>>, vector<1x8x96xf32>
    %189 = vector.shape_cast %188 : vector<1x8x96xf32> to vector<8x96xf32>
    %190 = vector.extract_strided_slice %185 {offsets = [0, 0], sizes = [32, 96], strides = [1, 1]} : vector<32x160xf32> to vector<32x96xf32>
    %191 = vector.extract_strided_slice %185 {offsets = [0, 96], sizes = [32, 64], strides = [1, 1]} : vector<32x160xf32> to vector<32x64xf32>
    %192 = vector.extract_strided_slice %187 {offsets = [0, 0], sizes = [32, 32], strides = [1, 1]} : vector<96x32xf32> to vector<32x32xf32>
    %193 = vector.extract_strided_slice %187 {offsets = [32, 0], sizes = [64, 32], strides = [1, 1]} : vector<96x32xf32> to vector<64x32xf32>
    %194 = vector.extract_strided_slice %189 {offsets = [0, 0], sizes = [1, 32], strides = [1, 1]} : vector<8x96xf32> to vector<1x32xf32>
    %195 = vector.extract_strided_slice %189 {offsets = [1, 0], sizes = [1, 32], strides = [1, 1]} : vector<8x96xf32> to vector<1x32xf32>
    %196 = vector.extract_strided_slice %189 {offsets = [2, 0], sizes = [1, 96], strides = [1, 1]} : vector<8x96xf32> to vector<1x96xf32>
    %197 = vector.extract_strided_slice %189 {offsets = [3, 0], sizes = [1, 32], strides = [1, 1]} : vector<8x96xf32> to vector<1x32xf32>
    %198 = vector.extract_strided_slice %189 {offsets = [4, 0], sizes = [1, 32], strides = [1, 1]} : vector<8x96xf32> to vector<1x32xf32>
    %199 = vector.extract_strided_slice %189 {offsets = [5, 0], sizes = [1, 32], strides = [1, 1]} : vector<8x96xf32> to vector<1x32xf32>
    %200 = vector.extract_strided_slice %189 {offsets = [6, 0], sizes = [1, 64], strides = [1, 1]} : vector<8x96xf32> to vector<1x64xf32>
    %201 = vector.extract_strided_slice %189 {offsets = [7, 0], sizes = [1, 32], strides = [1, 1]} : vector<8x96xf32> to vector<1x32xf32>
    %cst_58 = arith.constant dense<0.000000e+00> : vector<16xf32>
    %202 = vector.multi_reduction <add>, %183, %cst_58 [1] : vector<16x32xf32> to vector<16xf32>
    %203 = vector.shape_cast %202 : vector<16xf32> to vector<16x1xf32>
    %cst_59 = arith.constant 3.200000e+01 : f32
    %204 = vector.broadcast %cst_59 : f32 to vector<16x1xf32>
    %205 = arith.divf %203, %204 : vector<16x1xf32>
    %206 = vector.broadcast %205 : vector<16x1xf32> to vector<16x32xf32>
    %207 = arith.subf %183, %206 : vector<16x32xf32>
    %208 = arith.mulf %207, %207 : vector<16x32xf32>
    %cst_60 = arith.constant dense<0.000000e+00> : vector<16xf32>
    %209 = vector.multi_reduction <add>, %208, %cst_60 [1] : vector<16x32xf32> to vector<16xf32>
    %210 = vector.shape_cast %209 : vector<16xf32> to vector<16x1xf32>
    %cst_61 = arith.constant 3.200000e+01 : f32
    %211 = vector.broadcast %cst_61 : f32 to vector<16x1xf32>
    %212 = arith.divf %210, %211 : vector<16x1xf32>
    %213 = vector.broadcast %205 : vector<16x1xf32> to vector<16x32xf32>
    %214 = arith.subf %183, %213 : vector<16x32xf32>
    %cst_62 = arith.constant 9.99999996E-13 : f32
    %215 = vector.broadcast %cst_62 : f32 to vector<16x1xf32>
    %216 = arith.addf %212, %215 : vector<16x1xf32>
    %217 = math.rsqrt %216 : vector<16x1xf32>
    %218 = vector.broadcast %217 : vector<16x1xf32> to vector<16x32xf32>
    %219 = arith.mulf %214, %218 : vector<16x32xf32>
    %220 = vector.broadcast %194 : vector<1x32xf32> to vector<16x32xf32>
    %221 = arith.mulf %219, %220 : vector<16x32xf32>
    %222 = vector.broadcast %195 : vector<1x32xf32> to vector<16x32xf32>
    %223 = arith.addf %221, %222 : vector<16x32xf32>
    %cst_63 = arith.constant dense<0.000000e+00> : vector<16x96xf32>
    %224 = tpu.matmul %223, %190, %cst_63 {dimension_numbers = #tpu.dot_dimension_numbers<[1], [0], [0], [1], [0, 0, 1, 1], [], []>} : vector<16x32xf32>, vector<32x96xf32>, vector<16x96xf32> -> vector<16x96xf32>
    %225 = vector.broadcast %196 : vector<1x96xf32> to vector<16x96xf32>
    %226 = arith.addf %224, %225 : vector<16x96xf32>
    %227 = vector.extract_strided_slice %226 {offsets = [0, 0], sizes = [16, 32], strides = [1, 1]} : vector<16x96xf32> to vector<16x32xf32>
    %228 = vector.extract_strided_slice %226 {offsets = [0, 32], sizes = [16, 32], strides = [1, 1]} : vector<16x96xf32> to vector<16x32xf32>
    %229 = vector.extract_strided_slice %226 {offsets = [0, 64], sizes = [16, 32], strides = [1, 1]} : vector<16x96xf32> to vector<16x32xf32>
    %cst_64 = arith.constant 0.000000e+00 : f32
    %230 = vector.broadcast %cst_64 : f32 to vector<16x32xf32>
    %231 = vector.extract_strided_slice %227 {offsets = [0, 0], sizes = [16, 8], strides = [1, 1]} : vector<16x32xf32> to vector<16x8xf32>
    %232 = vector.shape_cast %231 : vector<16x8xf32> to vector<2x8x8xf32>
    %233 = vector.extract_strided_slice %228 {offsets = [0, 0], sizes = [16, 8], strides = [1, 1]} : vector<16x32xf32> to vector<16x8xf32>
    %234 = vector.shape_cast %233 : vector<16x8xf32> to vector<2x8x8xf32>
    %235 = vector.extract_strided_slice %229 {offsets = [0, 0], sizes = [16, 8], strides = [1, 1]} : vector<16x32xf32> to vector<16x8xf32>
    %236 = vector.shape_cast %235 : vector<16x8xf32> to vector<2x8x8xf32>
    "tpu.trace_start"() <{level = 10 : i32, message = "bqd,bkd->bqk"}> : () -> ()
    %cst_65 = arith.constant dense<0.000000e+00> : vector<2x8x8xf32>
    %237 = tpu.matmul %232, %234, %cst_65 {dimension_numbers = #tpu.dot_dimension_numbers<[2], [2], [1], [1], [0, 0, 0, 1, 1, 1], [0], [0]>} : vector<2x8x8xf32>, vector<2x8x8xf32>, vector<2x8x8xf32> -> vector<2x8x8xf32>
    "tpu.trace_stop"() : () -> ()
    %cst_66 = arith.constant 0.353553385 : f32
    %238 = vector.broadcast %cst_66 : f32 to vector<2x8x8xf32>
    %239 = arith.mulf %237, %238 : vector<2x8x8xf32>
    %cst_67 = arith.constant dense<0xFF800000> : vector<2x8xf32>
    %240 = vector.multi_reduction <maximumf>, %239, %cst_67 [2] : vector<2x8x8xf32> to vector<2x8xf32>
    %241 = vector.shape_cast %240 : vector<2x8xf32> to vector<2x8x1xf32>
    %242 = vector.broadcast %241 : vector<2x8x1xf32> to vector<2x8x8xf32>
    %243 = arith.subf %239, %242 : vector<2x8x8xf32>
    %244 = math.exp %243 : vector<2x8x8xf32>
    %cst_68 = arith.constant dense<0.000000e+00> : vector<2x8xf32>
    %245 = vector.multi_reduction <add>, %244, %cst_68 [2] : vector<2x8x8xf32> to vector<2x8xf32>
    %246 = vector.shape_cast %245 : vector<2x8xf32> to vector<2x8x1xf32>
    %247 = tpu.reciprocal %246 {approx = true} : vector<2x8x1xf32> -> vector<2x8x1xf32>
    %248 = vector.broadcast %247 : vector<2x8x1xf32> to vector<2x8x8xf32>
    %249 = arith.mulf %244, %248 : vector<2x8x8xf32>
    "tpu.trace_start"() <{level = 10 : i32, message = "bqk,bkd->bqd"}> : () -> ()
    %cst_69 = arith.constant dense<0.000000e+00> : vector<2x8x8xf32>
    %250 = tpu.matmul %249, %236, %cst_69 {dimension_numbers = #tpu.dot_dimension_numbers<[2], [1], [1], [2], [0, 0, 0, 1, 1, 2], [0], [0]>} : vector<2x8x8xf32>, vector<2x8x8xf32>, vector<2x8x8xf32> -> vector<2x8x8xf32>
    "tpu.trace_stop"() : () -> ()
    %251 = vector.shape_cast %250 : vector<2x8x8xf32> to vector<16x8xf32>
    %252 = vector.extract_strided_slice %192 {offsets = [0, 0], sizes = [8, 32], strides = [1, 1]} : vector<32x32xf32> to vector<8x32xf32>
    %cst_70 = arith.constant dense<0.000000e+00> : vector<16x32xf32>
    %253 = tpu.matmul %251, %252, %cst_70 {dimension_numbers = #tpu.dot_dimension_numbers<[1], [0], [0], [1], [0, 0, 1, 1], [], []>} : vector<16x8xf32>, vector<8x32xf32>, vector<16x32xf32> -> vector<16x32xf32>
    %254 = arith.addf %230, %253 : vector<16x32xf32>
    %255 = vector.extract_strided_slice %227 {offsets = [0, 8], sizes = [16, 8], strides = [1, 1]} : vector<16x32xf32> to vector<16x8xf32>
    %256 = vector.shape_cast %255 : vector<16x8xf32> to vector<2x8x8xf32>
    %257 = vector.extract_strided_slice %228 {offsets = [0, 8], sizes = [16, 8], strides = [1, 1]} : vector<16x32xf32> to vector<16x8xf32>
    %258 = vector.shape_cast %257 : vector<16x8xf32> to vector<2x8x8xf32>
    %259 = vector.extract_strided_slice %229 {offsets = [0, 8], sizes = [16, 8], strides = [1, 1]} : vector<16x32xf32> to vector<16x8xf32>
    %260 = vector.shape_cast %259 : vector<16x8xf32> to vector<2x8x8xf32>
    "tpu.trace_start"() <{level = 10 : i32, message = "bqd,bkd->bqk"}> : () -> ()
    %cst_71 = arith.constant dense<0.000000e+00> : vector<2x8x8xf32>
    %261 = tpu.matmul %256, %258, %cst_71 {dimension_numbers = #tpu.dot_dimension_numbers<[2], [2], [1], [1], [0, 0, 0, 1, 1, 1], [0], [0]>} : vector<2x8x8xf32>, vector<2x8x8xf32>, vector<2x8x8xf32> -> vector<2x8x8xf32>
    "tpu.trace_stop"() : () -> ()
    %cst_72 = arith.constant 0.353553385 : f32
    %262 = vector.broadcast %cst_72 : f32 to vector<2x8x8xf32>
    %263 = arith.mulf %261, %262 : vector<2x8x8xf32>
    %cst_73 = arith.constant dense<0xFF800000> : vector<2x8xf32>
    %264 = vector.multi_reduction <maximumf>, %263, %cst_73 [2] : vector<2x8x8xf32> to vector<2x8xf32>
    %265 = vector.shape_cast %264 : vector<2x8xf32> to vector<2x8x1xf32>
    %266 = vector.broadcast %265 : vector<2x8x1xf32> to vector<2x8x8xf32>
    %267 = arith.subf %263, %266 : vector<2x8x8xf32>
    %268 = math.exp %267 : vector<2x8x8xf32>
    %cst_74 = arith.constant dense<0.000000e+00> : vector<2x8xf32>
    %269 = vector.multi_reduction <add>, %268, %cst_74 [2] : vector<2x8x8xf32> to vector<2x8xf32>
    %270 = vector.shape_cast %269 : vector<2x8xf32> to vector<2x8x1xf32>
    %271 = tpu.reciprocal %270 {approx = true} : vector<2x8x1xf32> -> vector<2x8x1xf32>
    %272 = vector.broadcast %271 : vector<2x8x1xf32> to vector<2x8x8xf32>
    %273 = arith.mulf %268, %272 : vector<2x8x8xf32>
    "tpu.trace_start"() <{level = 10 : i32, message = "bqk,bkd->bqd"}> : () -> ()
    %cst_75 = arith.constant dense<0.000000e+00> : vector<2x8x8xf32>
    %274 = tpu.matmul %273, %260, %cst_75 {dimension_numbers = #tpu.dot_dimension_numbers<[2], [1], [1], [2], [0, 0, 0, 1, 1, 2], [0], [0]>} : vector<2x8x8xf32>, vector<2x8x8xf32>, vector<2x8x8xf32> -> vector<2x8x8xf32>
    "tpu.trace_stop"() : () -> ()
    %275 = vector.shape_cast %274 : vector<2x8x8xf32> to vector<16x8xf32>
    %276 = vector.extract_strided_slice %192 {offsets = [8, 0], sizes = [8, 32], strides = [1, 1]} : vector<32x32xf32> to vector<8x32xf32>
    %cst_76 = arith.constant dense<0.000000e+00> : vector<16x32xf32>
    %277 = tpu.matmul %275, %276, %cst_76 {dimension_numbers = #tpu.dot_dimension_numbers<[1], [0], [0], [1], [0, 0, 1, 1], [], []>} : vector<16x8xf32>, vector<8x32xf32>, vector<16x32xf32> -> vector<16x32xf32>
    %278 = arith.addf %254, %277 : vector<16x32xf32>
    %279 = vector.extract_strided_slice %227 {offsets = [0, 16], sizes = [16, 8], strides = [1, 1]} : vector<16x32xf32> to vector<16x8xf32>
    %280 = vector.shape_cast %279 : vector<16x8xf32> to vector<2x8x8xf32>
    %281 = vector.extract_strided_slice %228 {offsets = [0, 16], sizes = [16, 8], strides = [1, 1]} : vector<16x32xf32> to vector<16x8xf32>
    %282 = vector.shape_cast %281 : vector<16x8xf32> to vector<2x8x8xf32>
    %283 = vector.extract_strided_slice %229 {offsets = [0, 16], sizes = [16, 8], strides = [1, 1]} : vector<16x32xf32> to vector<16x8xf32>
    %284 = vector.shape_cast %283 : vector<16x8xf32> to vector<2x8x8xf32>
    "tpu.trace_start"() <{level = 10 : i32, message = "bqd,bkd->bqk"}> : () -> ()
    %cst_77 = arith.constant dense<0.000000e+00> : vector<2x8x8xf32>
    %285 = tpu.matmul %280, %282, %cst_77 {dimension_numbers = #tpu.dot_dimension_numbers<[2], [2], [1], [1], [0, 0, 0, 1, 1, 1], [0], [0]>} : vector<2x8x8xf32>, vector<2x8x8xf32>, vector<2x8x8xf32> -> vector<2x8x8xf32>
    "tpu.trace_stop"() : () -> ()
    %cst_78 = arith.constant 0.353553385 : f32
    %286 = vector.broadcast %cst_78 : f32 to vector<2x8x8xf32>
    %287 = arith.mulf %285, %286 : vector<2x8x8xf32>
    %cst_79 = arith.constant dense<0xFF800000> : vector<2x8xf32>
    %288 = vector.multi_reduction <maximumf>, %287, %cst_79 [2] : vector<2x8x8xf32> to vector<2x8xf32>
    %289 = vector.shape_cast %288 : vector<2x8xf32> to vector<2x8x1xf32>
    %290 = vector.broadcast %289 : vector<2x8x1xf32> to vector<2x8x8xf32>
    %291 = arith.subf %287, %290 : vector<2x8x8xf32>
    %292 = math.exp %291 : vector<2x8x8xf32>
    %cst_80 = arith.constant dense<0.000000e+00> : vector<2x8xf32>
    %293 = vector.multi_reduction <add>, %292, %cst_80 [2] : vector<2x8x8xf32> to vector<2x8xf32>
    %294 = vector.shape_cast %293 : vector<2x8xf32> to vector<2x8x1xf32>
    %295 = tpu.reciprocal %294 {approx = true} : vector<2x8x1xf32> -> vector<2x8x1xf32>
    %296 = vector.broadcast %295 : vector<2x8x1xf32> to vector<2x8x8xf32>
    %297 = arith.mulf %292, %296 : vector<2x8x8xf32>
    "tpu.trace_start"() <{level = 10 : i32, message = "bqk,bkd->bqd"}> : () -> ()
    %cst_81 = arith.constant dense<0.000000e+00> : vector<2x8x8xf32>
    %298 = tpu.matmul %297, %284, %cst_81 {dimension_numbers = #tpu.dot_dimension_numbers<[2], [1], [1], [2], [0, 0, 0, 1, 1, 2], [0], [0]>} : vector<2x8x8xf32>, vector<2x8x8xf32>, vector<2x8x8xf32> -> vector<2x8x8xf32>
    "tpu.trace_stop"() : () -> ()
    %299 = vector.shape_cast %298 : vector<2x8x8xf32> to vector<16x8xf32>
    %300 = vector.extract_strided_slice %192 {offsets = [16, 0], sizes = [8, 32], strides = [1, 1]} : vector<32x32xf32> to vector<8x32xf32>
    %cst_82 = arith.constant dense<0.000000e+00> : vector<16x32xf32>
    %301 = tpu.matmul %299, %300, %cst_82 {dimension_numbers = #tpu.dot_dimension_numbers<[1], [0], [0], [1], [0, 0, 1, 1], [], []>} : vector<16x8xf32>, vector<8x32xf32>, vector<16x32xf32> -> vector<16x32xf32>
    %302 = arith.addf %278, %301 : vector<16x32xf32>
    %303 = vector.extract_strided_slice %227 {offsets = [0, 24], sizes = [16, 8], strides = [1, 1]} : vector<16x32xf32> to vector<16x8xf32>
    %304 = vector.shape_cast %303 : vector<16x8xf32> to vector<2x8x8xf32>
    %305 = vector.extract_strided_slice %228 {offsets = [0, 24], sizes = [16, 8], strides = [1, 1]} : vector<16x32xf32> to vector<16x8xf32>
    %306 = vector.shape_cast %305 : vector<16x8xf32> to vector<2x8x8xf32>
    %307 = vector.extract_strided_slice %229 {offsets = [0, 24], sizes = [16, 8], strides = [1, 1]} : vector<16x32xf32> to vector<16x8xf32>
    %308 = vector.shape_cast %307 : vector<16x8xf32> to vector<2x8x8xf32>
    "tpu.trace_start"() <{level = 10 : i32, message = "bqd,bkd->bqk"}> : () -> ()
    %cst_83 = arith.constant dense<0.000000e+00> : vector<2x8x8xf32>
    %309 = tpu.matmul %304, %306, %cst_83 {dimension_numbers = #tpu.dot_dimension_numbers<[2], [2], [1], [1], [0, 0, 0, 1, 1, 1], [0], [0]>} : vector<2x8x8xf32>, vector<2x8x8xf32>, vector<2x8x8xf32> -> vector<2x8x8xf32>
    "tpu.trace_stop"() : () -> ()
    %cst_84 = arith.constant 0.353553385 : f32
    %310 = vector.broadcast %cst_84 : f32 to vector<2x8x8xf32>
    %311 = arith.mulf %309, %310 : vector<2x8x8xf32>
    %cst_85 = arith.constant dense<0xFF800000> : vector<2x8xf32>
    %312 = vector.multi_reduction <maximumf>, %311, %cst_85 [2] : vector<2x8x8xf32> to vector<2x8xf32>
    %313 = vector.shape_cast %312 : vector<2x8xf32> to vector<2x8x1xf32>
    %314 = vector.broadcast %313 : vector<2x8x1xf32> to vector<2x8x8xf32>
    %315 = arith.subf %311, %314 : vector<2x8x8xf32>
    %316 = math.exp %315 : vector<2x8x8xf32>
    %cst_86 = arith.constant dense<0.000000e+00> : vector<2x8xf32>
    %317 = vector.multi_reduction <add>, %316, %cst_86 [2] : vector<2x8x8xf32> to vector<2x8xf32>
    %318 = vector.shape_cast %317 : vector<2x8xf32> to vector<2x8x1xf32>
    %319 = tpu.reciprocal %318 {approx = true} : vector<2x8x1xf32> -> vector<2x8x1xf32>
    %320 = vector.broadcast %319 : vector<2x8x1xf32> to vector<2x8x8xf32>
    %321 = arith.mulf %316, %320 : vector<2x8x8xf32>
    "tpu.trace_start"() <{level = 10 : i32, message = "bqk,bkd->bqd"}> : () -> ()
    %cst_87 = arith.constant dense<0.000000e+00> : vector<2x8x8xf32>
    %322 = tpu.matmul %321, %308, %cst_87 {dimension_numbers = #tpu.dot_dimension_numbers<[2], [1], [1], [2], [0, 0, 0, 1, 1, 2], [0], [0]>} : vector<2x8x8xf32>, vector<2x8x8xf32>, vector<2x8x8xf32> -> vector<2x8x8xf32>
    "tpu.trace_stop"() : () -> ()
    %323 = vector.shape_cast %322 : vector<2x8x8xf32> to vector<16x8xf32>
    %324 = vector.extract_strided_slice %192 {offsets = [24, 0], sizes = [8, 32], strides = [1, 1]} : vector<32x32xf32> to vector<8x32xf32>
    %cst_88 = arith.constant dense<0.000000e+00> : vector<16x32xf32>
    %325 = tpu.matmul %323, %324, %cst_88 {dimension_numbers = #tpu.dot_dimension_numbers<[1], [0], [0], [1], [0, 0, 1, 1], [], []>} : vector<16x8xf32>, vector<8x32xf32>, vector<16x32xf32> -> vector<16x32xf32>
    %326 = arith.addf %302, %325 : vector<16x32xf32>
    %327 = vector.broadcast %197 : vector<1x32xf32> to vector<16x32xf32>
    %328 = arith.addf %326, %327 : vector<16x32xf32>
    %329 = arith.addf %328, %183 : vector<16x32xf32>
    %cst_89 = arith.constant dense<0.000000e+00> : vector<16xf32>
    %330 = vector.multi_reduction <add>, %329, %cst_89 [1] : vector<16x32xf32> to vector<16xf32>
    %331 = vector.shape_cast %330 : vector<16xf32> to vector<16x1xf32>
    %cst_90 = arith.constant 3.200000e+01 : f32
    %332 = vector.broadcast %cst_90 : f32 to vector<16x1xf32>
    %333 = arith.divf %331, %332 : vector<16x1xf32>
    %334 = vector.broadcast %333 : vector<16x1xf32> to vector<16x32xf32>
    %335 = arith.subf %329, %334 : vector<16x32xf32>
    %336 = arith.mulf %335, %335 : vector<16x32xf32>
    %cst_91 = arith.constant dense<0.000000e+00> : vector<16xf32>
    %337 = vector.multi_reduction <add>, %336, %cst_91 [1] : vector<16x32xf32> to vector<16xf32>
    %338 = vector.shape_cast %337 : vector<16xf32> to vector<16x1xf32>
    %cst_92 = arith.constant 3.200000e+01 : f32
    %339 = vector.broadcast %cst_92 : f32 to vector<16x1xf32>
    %340 = arith.divf %338, %339 : vector<16x1xf32>
    %341 = vector.broadcast %333 : vector<16x1xf32> to vector<16x32xf32>
    %342 = arith.subf %329, %341 : vector<16x32xf32>
    %cst_93 = arith.constant 9.99999996E-13 : f32
    %343 = vector.broadcast %cst_93 : f32 to vector<16x1xf32>
    %344 = arith.addf %340, %343 : vector<16x1xf32>
    %345 = math.rsqrt %344 : vector<16x1xf32>
    %346 = vector.broadcast %345 : vector<16x1xf32> to vector<16x32xf32>
    %347 = arith.mulf %342, %346 : vector<16x32xf32>
    %348 = vector.broadcast %198 : vector<1x32xf32> to vector<16x32xf32>
    %349 = arith.mulf %347, %348 : vector<16x32xf32>
    %350 = vector.broadcast %199 : vector<1x32xf32> to vector<16x32xf32>
    %351 = arith.addf %349, %350 : vector<16x32xf32>
    %cst_94 = arith.constant dense<0.000000e+00> : vector<16x64xf32>
    %352 = tpu.matmul %351, %191, %cst_94 {dimension_numbers = #tpu.dot_dimension_numbers<[1], [0], [0], [1], [0, 0, 1, 1], [], []>} : vector<16x32xf32>, vector<32x64xf32>, vector<16x64xf32> -> vector<16x64xf32>
    %353 = vector.broadcast %200 : vector<1x64xf32> to vector<16x64xf32>
    %354 = arith.addf %352, %353 : vector<16x64xf32>
    %cst_95 = arith.constant 5.000000e-01 : f32
    %355 = vector.broadcast %cst_95 : f32 to vector<16x64xf32>
    %356 = arith.mulf %354, %355 : vector<16x64xf32>
    %cst_96 = arith.constant 1.41421354 : f32
    %357 = vector.broadcast %cst_96 : f32 to vector<16x64xf32>
    %358 = arith.divf %354, %357 : vector<16x64xf32>
    %359 = math.erf %358 : vector<16x64xf32>
    %cst_97 = arith.constant 1.000000e+00 : f32
    %360 = vector.broadcast %cst_97 : f32 to vector<16x64xf32>
    %361 = arith.addf %360, %359 : vector<16x64xf32>
    %362 = arith.mulf %356, %361 : vector<16x64xf32>
    %cst_98 = arith.constant dense<0.000000e+00> : vector<16x32xf32>
    %363 = tpu.matmul %362, %193, %cst_98 {dimension_numbers = #tpu.dot_dimension_numbers<[1], [0], [0], [1], [0, 0, 1, 1], [], []>} : vector<16x64xf32>, vector<64x32xf32>, vector<16x32xf32> -> vector<16x32xf32>
    %364 = vector.broadcast %201 : vector<1x32xf32> to vector<16x32xf32>
    %365 = arith.addf %363, %364 : vector<16x32xf32>
    %366 = arith.addf %365, %329 : vector<16x32xf32>
    %c0_99 = arith.constant 0 : index
    %c0_100 = arith.constant 0 : index
    %367 = vector.load %arg4[%c0_99, %c0_100] : memref<16x32xf32, #tpu.memory_space<vmem>>, vector<16x32xf32>
    tpu.vector_store %arg4[%c0_99, %c0_100], %366 {strides = array<i32>} : memref<16x32xf32, #tpu.memory_space<vmem>>, vector<16x32xf32>,
    return
  }
}

</mosaic_0001>

<bundles_post_ra>
// kernel: tpu_custom_call.1
= control target key start
LH: loop header
LB: loop body
LE: loop exit
PB: predicated region body
PF: predicated region fallthrough
CT: control target
= control target key end

     0   :  { %vm41_vm0 = vcmask 261120   ;;  %s2895_s0 = inlined_call_operand.vmem [shape: f32[16,32], index: 0, kind: input, shape index: {}]   ;;  %s2896_s1 = inlined_call_operand.vmem [shape: f32[2,32,160], index: 1, kind: input, shape index: {}]   ;;  %s2897_s2 = inlined_call_operand.vmem [shape: f32[2,96,32], index: 2, kind: input, shape index: {}]   ;;  %s2898_s3 = inlined_call_operand.vmem [shape: f32[2,8,96], index: 3, kind: input, shape index: {}]   ;;  %s2899_s4 = inlined_call_operand.hbm [shape: f32[16,32], index: 4, kind: output, shape index: {}]  }
   0x1   :  { %v2349_v0 = vld [vmem:[%s2895_s0] sm:$0xff]  ;;  %v2354_v1 = vld [vmem:[%s2895_s0 + $0x8] sm:$0xff] }
   0x2   :  { %9 = vsyncpa [#allocation3], 0  ;;  %v42_v2 = vsel %vm41_vm0, %v2349_v0, 0.0  ;;  %v45_v3 = vsel %vm41_vm0, %v2354_v1, 0.0  ;;  %v2304_v4 = vmov 32.0   ;;  %v2371_v21 = vld [vmem:[%s2896_s1 + $0x30] sm:$0xff] }
   0x3   :  { %43 = vadd.xlane.f32.xlu0 %v42_v2  ;;  %46 = vadd.xlane.f32.xlu1 %v45_v3  ;;  %2186 = vrcp.f32 %v2304_v4  ;;  %v2377_v22 = vld [vmem:[%s2896_s1 + $0x20] sm:$0xff]  ;;  %v2383_v23 = vld [vmem:[%s2896_s1 + $0x10] sm:$0xff]  ;;  %s2305_s28 = smov 96   ;;  %s2306_s29 = smov 88   ;;  %vm132_vm8 = vcmask 64512  }
   0x4   :  { %118 = vmatpush.msra.mxu0 %v2371_v21  ;;  %v2388_v24 = vld [vmem:[%s2896_s1] sm:$0xff]  ;;  %s2307_s30 = smov 120   ;;  %s2308_s5 = smov 64  }
   0x5   :  { %v2397_v40 = vld [vmem:[%s2898_s3] sm:$0xff]  ;;  %s2309_s6 = smov 112   ;;  %s2310_s7 = smov 56  }
   0x6   :  { %119 = vmatpush.msra.mxu0 %v2377_v22  ;;  %v93_v44 = vperm.slane %v2397_v40, 0  ;;  %v96_v48 = vperm.slane %v2397_v40, 1  ;;  %v99_v54 = vperm.slane %v2397_v40, 2  ;;  %s2311_s10 = smov 104   ;;  %s2312_s11 = smov 72  }
   0x7   :  { %s2313_s12 = smov 80   ;;  %s2314_s15 = smov 40  }
   0x8   :  { %120 = vmatpush.msra.mxu0 %v2383_v23  ;;  %s2315_s16 = smov 48   ;;  %s2316_s22 = smov 32  }
   0x9   :  { %v2187_v5 = vpop.eup %2186 }
   0xa   :  { %v49_v6 = vmul.f32 32.0, %v2187_v5  ;;  %vm53_vm1 = vweird.f32 %v2187_v5  ;;  %121 = vmatpush.msra.mxu0 %v2388_v24 }
   0xc   :  { %v50_v7 = vsub.f32 1.0, %v49_v6 }
   0xe   :  { %v51_v8 = vmul.f32 %v2187_v5, %v50_v7 }
  0x10   :  { %v52_v9 = vadd.f32 %v2187_v5, %v51_v8 }
  0x12   :  { %v2360_v10 = vsel %vm53_vm1, %v2187_v5, %v52_v9 }
  0x76   :  { %v44_v11 = vpop.xlane.xlu0 %43  ;;  %v47_v12 = vpop.xlane.xlu1 %46 }
  0x77   :  { %v55_v13 = vmul.f32 %v2360_v10, %v44_v11  ;;  %v56_v14 = vmul.f32 %v2360_v10, %v47_v12 }
  0x79   :  { %v57_v15 = vsub.f32 %v2349_v0, %v55_v13  ;;  %v58_v16 = vsub.f32 %v2354_v1, %v56_v14 }
  0x7b   :  { %v59_v17 = vmul.f32 %v57_v15, %v57_v15  ;;  %v60_v18 = vmul.f32 %v58_v16, %v58_v16 }
  0x7d   :  { %v61_v19 = vsel %vm41_vm0, %v59_v17, 0.0  ;;  %v64_v20 = vsel %vm41_vm0, %v60_v18, 0.0 }
  0x7e   :  { %62 = vadd.xlane.f32.xlu0 %v61_v19  ;;  %65 = vadd.xlane.f32.xlu2 %v64_v20 }
  0xf1   :  { %v63_v25 = vpop.xlane.xlu0 %62  ;;  %v66_v26 = vpop.xlane.xlu2 %65 }
  0xf2   :  { %v67_v27 = vmul.f32 %v63_v25, %v2360_v10  ;;  %v68_v28 = vmul.f32 %v66_v26, %v2360_v10 }
  0xf4   :  { %v69_v29 = vadd.f32 1e-12, %v67_v27  ;;  %v70_v30 = vadd.f32 1e-12, %v68_v28 }
  0xf6   :  { %2188 = vrsqrt.f32 %v69_v29  ;;  %vm87_vm2 = vweird.f32 %v70_v30  ;;  %vm77_vm5 = vweird.f32 %v69_v29 }
  0xf7   :  { %2190 = vrsqrt.f32 %v70_v30 }
  0xfc   :  { %v2189_v31 = vpop.eup %2188 }
  0xfd   :  { %v2191_v32 = vpop.eup %2190  ;;  %v72_v33 = vmul.f32 %v2189_v31, %v69_v29  ;;  %vm78_vm4 = vweird.f32 %v2189_v31  ;;  %v28_v29 = vld [vmem:[%s2897_s2] sm:$0xff] }
  0xfe   :  { %v82_v34 = vmul.f32 %v2191_v32, %v70_v30  ;;  %vm88_vm3 = vweird.f32 %v2191_v32  ;;  %vm79_vm7 = vmor %vm77_vm5, %vm78_vm4  ;;  %442 = vmatpush.msrb.mxu0 %v28_v29  ;;  %vm989_vm5 = vcmask 523264  }
  0xff   :  { %v73_v35 = vmul.f32 %v2189_v31, %v72_v33  ;;  %vm89_vm6 = vmor %vm87_vm2, %vm88_vm3 }
 0x100   :  { %v83_v36 = vmul.f32 %v2191_v32, %v82_v34 }
 0x101   :  { %v74_v37 = vmul.f32 0.5, %v73_v35 }
 0x102   :  { %v84_v38 = vmul.f32 0.5, %v83_v36 }
 0x103   :  { %v75_v39 = vsub.f32 1.5, %v74_v37 }
 0x104   :  { %v85_v41 = vsub.f32 1.5, %v84_v38 }
 0x105   :  { %v76_v42 = vmul.f32 %v2189_v31, %v75_v39 }
 0x106   :  { %v86_v43 = vmul.f32 %v2191_v32, %v85_v41 }
 0x107   :  { %v80_v45 = vsel %vm79_vm7, %v2189_v31, %v76_v42 }
 0x108   :  { %v90_v46 = vsel %vm89_vm6, %v2191_v32, %v86_v43  ;;  %v91_v47 = vmul.f32 %v80_v45, %v57_v15 }
 0x109   :  { %v92_v50 = vmul.f32 %v90_v46, %v58_v16 }
 0x10a   :  { %v94_v49 = vmul.f32 %v93_v44, %v91_v47 }
 0x10b   :  { %v95_v52 = vmul.f32 %v93_v44, %v92_v50 }
 0x10c   :  { %v97_v51 = vadd.f32 %v96_v48, %v94_v49 }
 0x10d   :  { %v98_v53 = vadd.f32 %v96_v48, %v95_v52 }
 0x10e   :  { %2028 = vmatmul.msk.f32.vlgmr.msra.gmra.mxu0 %vm41_vm0, %v97_v51 }
 0x116   :  { %2029 = vmatmul.msk.f32.gmra.mxu0 %vm41_vm0, %v98_v53 }
 0x18b   :  { %v123_v55 = vpop.f32.mrf.mxu0 }
 0x18c   :  { %v2404_v56 = vadd.f32 %v123_v55, %v99_v54 }
 0x18e   :  { %130 = vrot.lane.b32.xlu1 %v2404_v56, %s2305_s28 }
 0x193   :  { %v126_v57 = vpop.f32.mrf.mxu0 }
 0x194   :  { %v2408_v58 = vadd.f32 %v126_v57, %v99_v54 }
 0x196   :  { %158 = vrot.lane.b32.xlu0 %v2408_v58, %s2305_s28  ;;  %262 = vrot.lane.b32.xlu1 %v2404_v56, %s2306_s29 }
 0x19e   :  { %260 = vrot.lane.b32.xlu0 %v2404_v56, %s2307_s30  ;;  %290 = vrot.lane.b32.xlu1 %v2408_v58, %s2306_s29 }
 0x1a6   :  { %288 = vrot.lane.b32.xlu0 %v2408_v58, %s2307_s30 }
 0x200   :  { %v131_v59 = vpop.permute.xlu1 %130 }
 0x201   :  { %2030 = vmatpush.xpose.msk.msra.mxu1 %vm132_vm8, %v131_v59 }
 0x204   :  { %2031 = vmatmul.msk.f32.vlgmr.msra.gmra.mxu1 %vm132_vm8, %v2404_v56 }
 0x208   :  { %v159_v60 = vpop.permute.xlu0 %158  ;;  %v263_v61 = vpop.permute.xlu1 %262 }
 0x209   :  { %2032 = vmatpush.xpose.msk.msra.mxu2 %vm132_vm8, %v159_v60 }
 0x20c   :  { %2033 = vmatmul.msk.f32.vlgmr.msra.gmra.mxu2 %vm132_vm8, %v2408_v58 }
 0x210   :  { %v261_v62 = vpop.permute.xlu0 %260  ;;  %v291_v63 = vpop.permute.xlu1 %290 }
 0x211   :  { %2038 = vmatpush.xpose.msk.msrb.mxu2 %vm132_vm8, %v291_v63 }
 0x218   :  { %v289_v2 = vpop.permute.xlu0 %288 }
 0x219   :  { %2039 = vmatmul.msk.f32.vlgmr.msrb.gmra.mxu2 %vm132_vm8, %v289_v2 }
 0x281   :  { %v154_v3 = vpop.f32.mrf.mxu1 }
 0x282   :  { %v184_v4 = vmul.f32 0.35355338, %v154_v3 }
 0x284   :  { %v186_v5 = vsel %vm132_vm8, %v184_v4, -inf }
 0x285   :  { %187 = vmax.xlane.f32.xlu2 %v186_v5 }
 0x28f   :  { %v181_v12 = vpop.f32.mrf.mxu2 }
 0x290   :  { %v185_v13 = vmul.f32 0.35355338, %v181_v12 }
 0x292   :  { %v189_v14 = vsel %vm132_vm8, %v185_v13, -inf }
 0x29c   :  { %v313_v30 = vpop.f32.mrf.mxu2 }
 0x29d   :  { %v317_v31 = vmul.f32 0.35355338, %v313_v30 }
 0x29f   :  { %v321_v33 = vsel %vm132_vm8, %v317_v31, -inf }
 0x2f8   :  { %v188_v6 = vpop.xlane.xlu2 %187 }
 0x2f9   :  { %v192_v7 = vsub.f32 %v184_v4, %v188_v6  ;;  %v29_v6 = vld [vmem:[%s2897_s2 + $0x8] sm:$0xff] }
 0x2fa   :  { %413 = vmatpush.msra.mxu2 %v29_v6 }
 0x2fb   :  { %v194_v8 = vmul.f32 1.442695, %v192_v7 }
 0x2fd   :  { %2192 = vpow2.f32 %v194_v8 }
 0x303   :  { %v2193_v9 = vpop.eup %2192 }
 0x304   :  { %v198_v11 = vsel %vm132_vm8, %v2193_v9, 0.0 }
 0x305   :  { %199 = vadd.xlane.f32.xlu2 %v198_v11 }
 0x31d   :  { %208 = vrot.lane.b32.xlu2 %v2404_v56, %s2308_s5 }
 0x346   :  { %190 = vmax.xlane.f32.xlu2 %v189_v14 }
 0x35e   :  { %234 = vrot.lane.b32.xlu2 %v2408_v58, %s2308_s5 }
 0x366   :  { %450 = vrot.lane.b32.xlu2 %v2404_v56, %s2309_s6 }
 0x378   :  { %v200_v15 = vpop.xlane.xlu2 %199 }
 0x379   :  { %2194 = vrcp.f32 %v200_v15 }
 0x37f   :  { %v2195_v16 = vpop.eup %2194 }
 0x380   :  { %v209_v17 = vpop.permute.xlu2 %208  ;;  %v206_v18 = vmul.f32 %v2195_v16, %v2193_v9 }
 0x381   :  { %229 = vmatpush.msrb.mxu1 %v209_v17 }
 0x382   :  { %2034 = vmatmul.msk.f32.vlgmr.msrb.gmra.mxu1 %vm132_vm8, %v206_v18 }
 0x383   :  { %2036 = vmatpush.xpose.msk.msra.mxu1 %vm132_vm8, %v263_v61 }
 0x38a   :  { %2037 = vmatmul.msk.f32.vlgmr.msra.gmra.mxu1 %vm132_vm8, %v261_v62 }
 0x3b9   :  { %v191_v19 = vpop.xlane.xlu2 %190 }
 0x3ba   :  { %v193_v20 = vsub.f32 %v185_v13, %v191_v19 }
 0x3bc   :  { %v196_v25 = vmul.f32 1.442695, %v193_v20 }
 0x3be   :  { %2196 = vpow2.f32 %v196_v25 }
 0x3c1   :  { %v235_v26 = vpop.permute.xlu2 %234 }
 0x3c2   :  { %255 = vmatpush.msra.mxu3 %v235_v26 }
 0x3c4   :  { %v2197_v27 = vpop.eup %2196 }
 0x3c5   :  { %v201_v28 = vsel %vm132_vm8, %v2197_v27, 0.0 }
 0x3c6   :  { %202 = vadd.xlane.f32.xlu0 %v201_v28 }
 0x3c9   :  { %v451_v57 = vpop.permute.xlu2 %450 }
 0x3da   :  { %340 = vrot.lane.b32.xlu0 %v2404_v56, %s2310_s7 }
 0x3ff   :  { %v231_v32 = vpop.f32.mrf.mxu1 }
 0x400   :  { %2044 = vmatmul.msk.f32.vlgmr.msrb.gmra.mxu0 %vm132_vm8, %v231_v32 }
 0x404   :  { %322 = vmax.xlane.f32.xlu0 %v321_v33 }
 0x407   :  { %v285_v34 = vpop.f32.mrf.mxu1 }
 0x408   :  { %v316_v35 = vmul.f32 0.35355338, %v285_v34 }
 0x40a   :  { %v318_v36 = vsel %vm132_vm8, %v316_v35, -inf }
 0x40b   :  { %319 = vmax.xlane.f32.xlu1 %v318_v36 }
 0x418   :  { %613 = vrot.lane.b32.xlu0 %v2404_v56, %s2311_s10 }
 0x420   :  { %643 = vrot.lane.b32.xlu0 %v2408_v58, %s2312_s11 }
 0x428   :  { %641 = vrot.lane.b32.xlu0 %v2408_v58, %s2311_s10 }
 0x439   :  { %v203_v37 = vpop.xlane.xlu0 %202 }
 0x43a   :  { %2198 = vrcp.f32 %v203_v37 }
 0x440   :  { %v2199_v38 = vpop.eup %2198 }
 0x441   :  { %v207_v39 = vmul.f32 %v2199_v38, %v2197_v27 }
 0x443   :  { %2035 = vmatmul.msk.f32.vlgmr.msra.gmra.mxu3 %vm132_vm8, %v207_v39 }
 0x44c   :  { %v341_v41 = vpop.permute.xlu0 %340 }
 0x44d   :  { %361 = vmatpush.msrb.mxu3 %v341_v41 }
 0x477   :  { %v323_v42 = vpop.xlane.xlu0 %322 }
 0x478   :  { %v325_v43 = vsub.f32 %v317_v31, %v323_v42 }
 0x47a   :  { %v328_v44 = vmul.f32 1.442695, %v325_v43 }
 0x47c   :  { %2200 = vpow2.f32 %v328_v44 }
 0x47d   :  { %v2490_v32 = vpop.f32.mrf.mxu0 }
 0x47e   :  { %v320_v45 = vpop.xlane.xlu1 %319 }
 0x47f   :  { %v324_v46 = vsub.f32 %v316_v35, %v320_v45 }
 0x481   :  { %v326_v47 = vmul.f32 1.442695, %v324_v46  ;;  %v30_v46 = vld [vmem:[%s2897_s2 + $0x10] sm:$0xff] }
 0x482   :  { %v2201_v48 = vpop.eup %2200  ;;  %603 = vmatpush.msrb.mxu2 %v30_v46 }
 0x483   :  { %2202 = vpow2.f32 %v326_v47  ;;  %v333_v49 = vsel %vm132_vm8, %v2201_v48, 0.0 }
 0x484   :  { %334 = vadd.xlane.f32.xlu2 %v333_v49 }
 0x489   :  { %v2203_v50 = vpop.eup %2202 }
 0x48a   :  { %v330_v51 = vsel %vm132_vm8, %v2203_v50, 0.0  ;;  %v614_v5 = vpop.permute.xlu0 %613 }
 0x48b   :  { %331 = vadd.xlane.f32.xlu1 %v330_v51 }
 0x492   :  { %v644_v16 = vpop.permute.xlu0 %643 }
 0x49a   :  { %v642_v20 = vpop.permute.xlu0 %641 }
 0x4a4   :  { %452 = vrot.lane.b32.xlu1 %v2404_v56, %s2313_s12 }
 0x4ac   :  { %366 = vrot.lane.b32.xlu1 %v2408_v58, %s2310_s7 }
 0x4b4   :  { %480 = vrot.lane.b32.xlu1 %v2408_v58, %s2313_s12 }
 0x4bc   :  { %478 = vrot.lane.b32.xlu1 %v2408_v58, %s2309_s6 }
 0x4c4   :  { %615 = vrot.lane.b32.xlu1 %v2404_v56, %s2312_s11 }
 0x4c6   :  { %v257_v52 = vpop.f32.mrf.mxu3 }
 0x4c7   :  { %2045 = vmatmul.msk.f32.gmra.mxu0 %vm132_vm8, %v257_v52 }
 0x4f7   :  { %v335_v59 = vpop.xlane.xlu2 %334 }
 0x4fe   :  { %v332_v53 = vpop.xlane.xlu1 %331 }
 0x4ff   :  { %2204 = vrcp.f32 %v332_v53 }
 0x500   :  { %2206 = vrcp.f32 %v335_v59 }
 0x505   :  { %v2205_v54 = vpop.eup %2204 }
 0x506   :  { %v338_v55 = vmul.f32 %v2205_v54, %v2203_v50  ;;  %v2207_v61 = vpop.eup %2206 }
 0x507   :  { %v339_v62 = vmul.f32 %v2207_v61, %v2201_v48 }
 0x508   :  { %2040 = vmatmul.msk.f32.vlgmr.msrb.gmra.mxu3 %vm132_vm8, %v338_v55 }
 0x516   :  { %v453_v60 = vpop.permute.xlu1 %452 }
 0x517   :  { %2046 = vmatpush.xpose.msk.msra.mxu3 %vm132_vm8, %v453_v60 }
 0x51a   :  { %2047 = vmatmul.msk.f32.vlgmr.msra.gmra.mxu3 %vm132_vm8, %v451_v57 }
 0x51e   :  { %v367_v63 = vpop.permute.xlu1 %366 }
 0x51f   :  { %387 = vmatpush.msrb.mxu1 %v367_v63 }
 0x520   :  { %2041 = vmatmul.msk.f32.vlgmr.msrb.gmra.mxu1 %vm132_vm8, %v339_v62 }
 0x526   :  { %v481_v2 = vpop.permute.xlu1 %480 }
 0x527   :  { %2048 = vmatpush.xpose.msk.msra.mxu1 %vm132_vm8, %v481_v2 }
 0x52e   :  { %v479_v3 = vpop.permute.xlu1 %478 }
 0x52f   :  { %2049 = vmatmul.msk.f32.vlgmr.msra.gmra.mxu1 %vm132_vm8, %v479_v3 }
 0x536   :  { %v616_v4 = vpop.permute.xlu1 %615 }
 0x537   :  { %2054 = vmatpush.xpose.msk.msra.mxu0 %vm132_vm8, %v616_v4  ;;  %v31_v4 = vld [vmem:[%s2897_s2 + $0x18] sm:$0xff] }
 0x53a   :  { %2055 = vmatmul.msk.f32.vlgmr.msra.gmra.mxu0 %vm132_vm8, %v614_v5 }
 0x544   :  { %v2492_v33 = vpop.f32.mrf.mxu0 }
 0x58b   :  { %v363_v7 = vpop.f32.mrf.mxu3 }
 0x58c   :  { %2042 = vmatmul.msk.f32.vlgmr.msra.gmra.mxu2 %vm132_vm8, %v363_v7 }
 0x59d   :  { %v389_v8 = vpop.f32.mrf.mxu1  ;;  %v475_v9 = vpop.f32.mrf.mxu3 }
 0x59e   :  { %v506_v11 = vmul.f32 0.35355338, %v475_v9  ;;  %2043 = vmatmul.msk.f32.gmra.mxu2 %vm132_vm8, %v389_v8 }
 0x5a0   :  { %v508_v12 = vsel %vm132_vm8, %v506_v11, -inf }
 0x5a1   :  { %509 = vmax.xlane.f32.xlu1 %v508_v12 }
 0x5ac   :  { %v503_v13 = vpop.f32.mrf.mxu1 }
 0x5ad   :  { %v507_v14 = vmul.f32 0.35355338, %v503_v13 }
 0x5af   :  { %v511_v15 = vsel %vm132_vm8, %v507_v14, -inf }
 0x5b0   :  { %512 = vmax.xlane.f32.xlu0 %v511_v15 }
 0x5b7   :  { %v638_v34 = vpop.f32.mrf.mxu0 }
 0x5b8   :  { %v669_v35 = vmul.f32 0.35355338, %v638_v34 }
 0x5ba   :  { %v671_v36 = vsel %vm132_vm8, %v669_v35, -inf }
 0x5c4   :  { %693 = vrot.lane.b32.xlu0 %v2404_v56, %s2314_s15 }
 0x614   :  { %v510_v17 = vpop.xlane.xlu1 %509 }
 0x615   :  { %v514_v18 = vsub.f32 %v506_v11, %v510_v17  ;;  %v415_v11 = vpop.f32.mrf.mxu2  ;;  %v776_v17 = vperm.slane %v2397_v40, 3 }
 0x616   :  { %v445_v15 = vadd.f32 %v2490_v32, %v415_v11 }
 0x617   :  { %v516_v19 = vmul.f32 1.442695, %v514_v18 }
 0x619   :  { %2208 = vpow2.f32 %v516_v19 }
 0x61f   :  { %v2209_v25 = vpop.eup %2208 }
 0x620   :  { %v520_v26 = vsel %vm132_vm8, %v2209_v25, 0.0 }
 0x621   :  { %521 = vadd.xlane.f32.xlu2 %v520_v26  ;;  %v418_v12 = vpop.f32.mrf.mxu2  ;;  %v23_v26 = vld [vmem:[%s2896_s1 + $0x18] sm:$0xff] }
 0x623   :  { %v513_v27 = vpop.xlane.xlu0 %512 }
 0x624   :  { %v515_v28 = vsub.f32 %v507_v14, %v513_v27  ;;  %v27_v14 = vld [vmem:[%s2896_s1 + $0x38] sm:$0xff] }
 0x625   :  { %v2146_v18 = vpack.i.bf16 %v27_v14, %v2371_v21  ;;  %v25_v21 = vld [vmem:[%s2896_s1 + $0x28] sm:$0xff] }
 0x626   :  { %v518_v29 = vmul.f32 1.442695, %v515_v28 }
 0x628   :  { %2210 = vpow2.f32 %v518_v29  ;;  %v2156_v29 = vpack.i.bf16 %v23_v26, %v2383_v23 }
 0x62e   :  { %v2211_v30 = vpop.eup %2210 }
 0x62f   :  { %v523_v31 = vsel %vm132_vm8, %v2211_v30, 0.0 }
 0x630   :  { %524 = vadd.xlane.f32.xlu1 %v523_v31 }
 0x636   :  { %v694_v57 = vpop.permute.xlu0 %693 }
 0x639   :  { %530 = vrot.lane.b32.xlu2 %v2404_v56, %s2315_s16 }
 0x662   :  { %672 = vmax.xlane.f32.xlu2 %v671_v36  ;;  %v21_v36 = vld [vmem:[%s2896_s1 + $0x8] sm:$0xff] }
 0x694   :  { %v522_v37 = vpop.xlane.xlu2 %521 }
 0x695   :  { %2212 = vrcp.f32 %v522_v37 }
 0x69b   :  { %v2213_v38 = vpop.eup %2212 }
 0x69c   :  { %v528_v39 = vmul.f32 %v2213_v38, %v2209_v25  ;;  %v531_v41 = vpop.permute.xlu2 %530  ;;  %v448_v38 = vadd.f32 %v2492_v33, %v418_v12 }
 0x69d   :  { %551 = vmatpush.msrb.mxu3 %v531_v41 }
 0x69e   :  { %2050 = vmatmul.msk.f32.vlgmr.msrb.gmra.mxu3 %vm132_vm8, %v528_v39 }
 0x69f   :  { %2056 = vmatpush.xpose.msk.msra.mxu3 %vm132_vm8, %v644_v16 }
 0x6a3   :  { %v525_v51 = vpop.xlane.xlu1 %524  ;;  %766 = vmatpush.msrb.mxu3 %v31_v4 }
 0x6a6   :  { %2057 = vmatmul.msk.f32.vlgmr.msra.gmra.mxu3 %vm132_vm8, %v642_v20 }
 0x6d5   :  { %v673_v56 = vpop.xlane.xlu2 %672 }
 0x6d6   :  { %v677_v42 = vsub.f32 %v669_v35, %v673_v56 }
 0x6d8   :  { %v679_v43 = vmul.f32 1.442695, %v677_v42 }
 0x6da   :  { %2214 = vpow2.f32 %v679_v43 }
 0x6db   :  { %2216 = vrcp.f32 %v525_v51 }
 0x6e0   :  { %v2215_v44 = vpop.eup %2214 }
 0x6e1   :  { %v683_v45 = vsel %vm132_vm8, %v2215_v44, 0.0  ;;  %v2217_v53 = vpop.eup %2216 }
 0x6e2   :  { %684 = vadd.xlane.f32.xlu1 %v683_v45  ;;  %v529_v54 = vmul.f32 %v2217_v53, %v2211_v30  ;;  %v2151_v30 = vpack.i.bf16 %v25_v21, %v2377_v22  ;;  %v2161_v22 = vpack.i.bf16 %v21_v36, %v2388_v24 }
 0x6fb   :  { %556 = vrot.lane.b32.xlu1 %v2408_v58, %s2315_s16 }
 0x721   :  { %v553_v47 = vpop.f32.mrf.mxu3 }
 0x722   :  { %2052 = vmatmul.msk.f32.vlgmr.msrb.gmra.mxu2 %vm132_vm8, %v553_v47 }
 0x729   :  { %v666_v48 = vpop.f32.mrf.mxu3 }
 0x72a   :  { %v670_v49 = vmul.f32 0.35355338, %v666_v48 }
 0x72c   :  { %v674_v50 = vsel %vm132_vm8, %v670_v49, -inf }
 0x72d   :  { %675 = vmax.xlane.f32.xlu2 %v674_v50 }
 0x745   :  { %719 = vrot.lane.b32.xlu2 %v2408_v58, %s2314_s15 }
 0x755   :  { %v685_v52 = vpop.xlane.xlu1 %684 }
 0x756   :  { %2218 = vrcp.f32 %v685_v52 }
 0x75c   :  { %v2219_v59 = vpop.eup %2218 }
 0x75d   :  { %v691_v60 = vmul.f32 %v2219_v59, %v2215_v44 }
 0x76d   :  { %v557_v55 = vpop.permute.xlu1 %556 }
 0x76e   :  { %577 = vmatpush.msrb.mxu1 %v557_v55 }
 0x76f   :  { %2051 = vmatmul.msk.f32.vlgmr.msrb.gmra.mxu1 %vm132_vm8, %v529_v54 }
 0x770   :  { %714 = vmatpush.msra.mxu1 %v694_v57 }
 0x777   :  { %2058 = vmatmul.msk.f32.vlgmr.msra.gmra.mxu1 %vm132_vm8, %v691_v60 }
 0x7a0   :  { %v676_v61 = vpop.xlane.xlu2 %675 }
 0x7a1   :  { %v678_v62 = vsub.f32 %v670_v49, %v676_v61 }
 0x7a3   :  { %v681_v63 = vmul.f32 1.442695, %v678_v62 }
 0x7a5   :  { %2220 = vpow2.f32 %v681_v63  ;;  %v605_v13 = vpop.f32.mrf.mxu2 }
 0x7a6   :  { %v611_v16 = vadd.f32 %v605_v13, %v445_v15 }
 0x7a8   :  { %v720_v58 = vpop.permute.xlu2 %719 }
 0x7a9   :  { %740 = vmatpush.msrb.mxu0 %v720_v58 }
 0x7ab   :  { %v2221_v2 = vpop.eup %2220 }
 0x7ac   :  { %v686_v3 = vsel %vm132_vm8, %v2221_v2, 0.0 }
 0x7ad   :  { %687 = vadd.xlane.f32.xlu1 %v686_v3 }
 0x7c6   :  { %2147 = vrot.lane.b32.xlu1 %v2146_v18, %s2316_s22  ;;  %v2317_v18 = vmov 1.4142135  }
 0x7ce   :  { %2157 = vrot.lane.b32.xlu1 %v2156_v29, %s2316_s22  ;;  %v831_v29 = vperm.slane %v2397_v40, 6 }
 0x7ec   :  { %v579_v5 = vpop.f32.mrf.mxu1 }
 0x7ed   :  { %2053 = vmatmul.msk.f32.gmra.mxu2 %vm132_vm8, %v579_v5 }
 0x7f4   :  { %v716_v6 = vpop.f32.mrf.mxu1 }
 0x7f5   :  { %2060 = vmatmul.msk.f32.vlgmr.msrb.gmra.mxu3 %vm132_vm8, %v716_v6  ;;  %v825_v6 = vperm.slane %v2397_v40, 4 }
 0x820   :  { %v688_v7 = vpop.xlane.xlu1 %687 }
 0x821   :  { %2222 = vrcp.f32 %v688_v7 }
 0x827   :  { %v2223_v8 = vpop.eup %2222 }
 0x828   :  { %v692_v9 = vmul.f32 %v2223_v8, %v2221_v2 }
 0x82a   :  { %2059 = vmatmul.msk.f32.vlgmr.msrb.gmra.mxu0 %vm132_vm8, %v692_v9  ;;  %v828_v9 = vperm.slane %v2397_v40, 5 }
 0x838   :  { %v2148_v45 = vpop.permute.xlu1 %2147 }
 0x839   :  { %v2150_v46 = vunpack.i.h.bf16 %v2148_v45  ;;  %v2149_v47 = vunpack.i.l.bf16 %v2148_v45  ;;  %v35_v45 = vld [vmem:[%s2897_s2 + $0x38] sm:$0xff] }
 0x83b   :  { %v859_v24 = vsel %vm41_vm0, %v2149_v47, %v2150_v46 }
 0x83c   :  { %882 = vmatpush.msrb.mxu1 %v859_v24  ;;  %v34_v24 = vld [vmem:[%s2897_s2 + $0x30] sm:$0xff] }
 0x840   :  { %v2158_v50 = vpop.permute.xlu1 %2157 }
 0x841   :  { %v2160_v51 = vunpack.i.h.bf16 %v2158_v50  ;;  %v2159_v52 = vunpack.i.l.bf16 %v2158_v50  ;;  %v32_v50 = vld [vmem:[%s2897_s2 + $0x20] sm:$0xff] }
 0x870   :  { %v608_v37 = vpop.f32.mrf.mxu2 }
 0x871   :  { %v612_v39 = vadd.f32 %v608_v37, %v448_v38 }
 0x878   :  { %v768_v19 = vpop.f32.mrf.mxu3 }
 0x879   :  { %v774_v20 = vadd.f32 %v768_v19, %v611_v16 }
 0x87b   :  { %v777_v25 = vadd.f32 %v776_v17, %v774_v20 }
 0x87d   :  { %v2528_v27 = vadd.f32 %v777_v25, %v2349_v0 }
 0x87f   :  { %v781_v28 = vsel %vm41_vm0, %v2528_v27, 0.0 }
 0x880   :  { %782 = vadd.xlane.f32.xlu0 %v781_v28 }
 0x894   :  { %2152 = vrot.lane.b32.xlu0 %v2151_v30, %s2316_s22 }
 0x8a7   :  { %v742_v31 = vpop.f32.mrf.mxu0 }
 0x8a8   :  { %2061 = vmatmul.msk.f32.gmra.mxu3 %vm132_vm8, %v742_v31 }
 0x8f3   :  { %v783_v0 = vpop.xlane.xlu0 %782 }
 0x8f4   :  { %v787_v32 = vmul.f32 %v783_v0, %v2360_v10 }
 0x8f6   :  { %v789_v34 = vsub.f32 %v2528_v27, %v787_v32 }
 0x8f8   :  { %v791_v23 = vmul.f32 %v789_v34, %v789_v34 }
 0x8fa   :  { %v793_v35 = vsel %vm41_vm0, %v791_v23, 0.0  ;;  %v39_v23 = vld [vmem:[%s2897_s2 + $0x58] sm:$0xff] }
 0x8fb   :  { %794 = vadd.xlane.f32.xlu2 %v793_v35  ;;  %1004 = vmatpush.msra.mxu2 %v39_v23 }
 0x906   :  { %v2153_v48 = vpop.permute.xlu0 %2152 }
 0x907   :  { %v2155_v49 = vunpack.i.h.bf16 %v2153_v48  ;;  %v2154_v33 = vunpack.i.l.bf16 %v2153_v48 }
 0x909   :  { %v858_v53 = vsel %vm41_vm0, %v2154_v33, %v2155_v49  ;;  %v33_v49 = vld [vmem:[%s2897_s2 + $0x28] sm:$0xff] }
 0x90a   :  { %883 = vmatpush.msrb.mxu1 %v858_v53 }
 0x913   :  { %2162 = vrot.lane.b32.xlu2 %v2161_v22, %s2316_s22  ;;  %v38_v22 = vld [vmem:[%s2897_s2 + $0x50] sm:$0xff] }
 0x914   :  { %1005 = vmatpush.msra.mxu2 %v38_v22 }
 0x92b   :  { %v771_v41 = vpop.f32.mrf.mxu3 }
 0x92c   :  { %v775_v56 = vadd.f32 %v771_v41, %v612_v39  ;;  %v37_v39 = vld [vmem:[%s2897_s2 + $0x48] sm:$0xff] }
 0x92d   :  { %1006 = vmatpush.msra.mxu2 %v37_v39 }
 0x92e   :  { %v778_v42 = vadd.f32 %v776_v17, %v775_v56 }
 0x930   :  { %v2550_v43 = vadd.f32 %v778_v42, %v2354_v1  ;;  %v857_v1 = vsel %vm41_vm0, %v2159_v52, %v2160_v51  ;;  %v36_v42 = vld [vmem:[%s2897_s2 + $0x40] sm:$0xff] }
 0x931   :  { %884 = vmatpush.msrb.mxu1 %v857_v1  ;;  %1007 = vmatpush.msra.mxu2 %v36_v42 }
 0x932   :  { %v784_v44 = vsel %vm41_vm0, %v2550_v43, 0.0 }
 0x933   :  { %785 = vadd.xlane.f32.xlu1 %v784_v44  ;;  %1008 = vmatpush.msra.mxu2 %v35_v45 }
 0x935   :  { %1009 = vmatpush.msra.mxu2 %v34_v24 }
 0x937   :  { %1010 = vmatpush.msra.mxu2 %v33_v49 }
 0x939   :  { %1011 = vmatpush.msra.mxu2 %v32_v50 }
 0x96e   :  { %v795_v54 = vpop.xlane.xlu2 %794 }
 0x96f   :  { %v799_v55 = vmul.f32 %v795_v54, %v2360_v10 }
 0x971   :  { %v801_v57 = vadd.f32 1e-12, %v799_v55 }
 0x973   :  { %2224 = vrsqrt.f32 %v801_v57  ;;  %vm809_vm10 = vweird.f32 %v801_v57 }
 0x974   :  { %2226 = vrcp.f32 %v2317_v18 }
 0x976   :  { %v2163_v59 = vpop.permute.xlu2 %2162 }
 0x977   :  { %v2165_v60 = vunpack.i.h.bf16 %v2163_v59  ;;  %v2164_v61 = vunpack.i.l.bf16 %v2163_v59 }
 0x979   :  { %v2225_v62 = vpop.eup %2224  ;;  %v856_v63 = vsel %vm41_vm0, %v2164_v61, %v2165_v60 }
 0x97a   :  { %v804_v58 = vmul.f32 %v2225_v62, %v801_v57  ;;  %885 = vmatpush.msrb.mxu1 %v856_v63  ;;  %vm810_vm9 = vweird.f32 %v2225_v62  ;;  %v2227_v19 = vpop.eup %2226 }
 0x97b   :  { %vm811_vm11 = vmor %vm809_vm10, %vm810_vm9  ;;  %v896_v20 = vmul.f32 1.4142135, %v2227_v19  ;;  %vm900_vm12 = vweird.f32 %v2227_v19 }
 0x97c   :  { %v805_v2 = vmul.f32 %v2225_v62, %v804_v58 }
 0x97d   :  { %v897_v25 = vsub.f32 1.0, %v896_v20 }
 0x97e   :  { %v806_v3 = vmul.f32 0.5, %v805_v2 }
 0x97f   :  { %v898_v26 = vmul.f32 %v2227_v19, %v897_v25 }
 0x980   :  { %v807_v4 = vsub.f32 1.5, %v806_v3 }
 0x981   :  { %v899_v28 = vadd.f32 %v2227_v19, %v898_v26 }
 0x982   :  { %v808_v5 = vmul.f32 %v2225_v62, %v807_v4 }
 0x983   :  { %v2574_v30 = vsel %vm900_vm12, %v2227_v19, %v899_v28 }
 0x984   :  { %v812_v7 = vsel %vm811_vm11, %v2225_v62, %v808_v5 }
 0x985   :  { %v823_v8 = vmul.f32 %v812_v7, %v789_v34 }
 0x987   :  { %v826_v11 = vmul.f32 %v825_v6, %v823_v8 }
 0x989   :  { %v829_v12 = vadd.f32 %v828_v9, %v826_v11 }
 0x98b   :  { %2062 = vmatmul.msk.f32.vlgmr.msrb.gmra.mxu1 %vm41_vm0, %v829_v12 }
 0x9a6   :  { %v786_v13 = vpop.xlane.xlu1 %785 }
 0x9a7   :  { %v788_v14 = vmul.f32 %v786_v13, %v2360_v10 }
 0x9a9   :  { %v2568_v15 = vsub.f32 %v2550_v43, %v788_v14 }
 0x9ab   :  { %v792_v16 = vmul.f32 %v2568_v15, %v2568_v15 }
 0x9ad   :  { %v796_v17 = vsel %vm41_vm0, %v792_v16, 0.0 }
 0x9ae   :  { %797 = vadd.xlane.f32.xlu0 %v796_v17 }
 0xa08   :  { %v887_v21 = vpop.f32.mrf.mxu1 }
 0xa09   :  { %v2578_v31 = vadd.f32 %v887_v21, %v831_v29 }
 0xa0b   :  { %v902_v0 = vmul.f32 %v2574_v30, %v2578_v31 }
 0xa0d   :  { %v904_v32 = vmul.f32 %v902_v0, %v902_v0 }
 0xa0f   :  { %v905_v34 = vmin.f32 %v904_v32, 16.0 }
 0xa11   :  { %v906_v35 = vmul.f32 2.1237322e-06, %v905_v34  ;;  %v917_v36 = vmul.f32 3.8918573e-05, %v905_v34 }
 0xa13   :  { %v907_v37 = vadd.f32 0.00028619796, %v906_v35  ;;  %v918_v38 = vadd.f32 0.001143296, %v917_v36 }
 0xa15   :  { %v908_v41 = vmul.f32 %v907_v37, %v905_v34  ;;  %v919_v56 = vmul.f32 %v918_v38, %v905_v34 }
 0xa17   :  { %v920_v44 = vadd.f32 0.014752088, %v919_v56  ;;  %v909_v46 = vadd.f32 0.0036580483, %v908_v41 }
 0xa19   :  { %v921_v47 = vmul.f32 %v920_v44, %v905_v34  ;;  %v910_v33 = vmul.f32 %v909_v46, %v905_v34 }
 0xa1b   :  { %v922_v48 = vadd.f32 0.112945676, %v921_v47  ;;  %v911_v53 = vadd.f32 0.05243302, %v910_v33 }
 0xa1d   :  { %v923_v51 = vmul.f32 %v922_v48, %v905_v34  ;;  %v912_v59 = vmul.f32 %v911_v53, %v905_v34 }
 0xa1f   :  { %v924_v52 = vadd.f32 0.4994258, %v923_v51  ;;  %v913_v61 = vadd.f32 0.18741608, %v912_v59 }
 0xa21   :  { %v925_v1 = vmul.f32 %v924_v52, %v905_v34  ;;  %v798_v54 = vpop.xlane.xlu0 %797  ;;  %v914_v58 = vmul.f32 %v913_v61, %v905_v34  ;;  %v893_v34 = vmul.f32 0.5, %v2578_v31  ;;  %v988_v31 = vperm.slane %v2397_v40, 7 }
 0xa22   :  { %v800_v55 = vmul.f32 %v798_v54, %v2360_v10 }
 0xa23   :  { %v926_v57 = vadd.f32 1.0, %v925_v1  ;;  %v915_v8 = vadd.f32 1.1283791, %v914_v58 }
 0xa24   :  { %v802_v60 = vadd.f32 1e-12, %v800_v55 }
 0xa25   :  { %2228 = vrcp.f32 %v926_v57  ;;  %v938_v5 = vand.u32 2147483648, %v926_v57  ;;  %v936_v12 = vand.u32 2147483647, %v926_v57  ;;  %vm932_vm14 = vweird.f32 %v926_v57 }
 0xa26   :  { %2230 = vrsqrt.f32 %v802_v60  ;;  %v916_v18 = vmul.f32 %v915_v8, %v902_v0  ;;  %vm819_vm3 = vweird.f32 %v802_v60 }
 0xa27   :  { %v939_v16 = vor.u32 1.1754944e-38, %v938_v5  ;;  %vm937_vm2 = vcmp.eq.f32.partialorder %v936_v12, 8.507059e+37 }
 0xa2b   :  { %v2229_v62 = vpop.eup %2228 }
 0xa2c   :  { %v2231_v63 = vpop.eup %2230  ;;  %v928_v2 = vmul.f32 %v2229_v62, %v926_v57  ;;  %vm933_vm13 = vweird.f32 %v2229_v62 }
 0xa2d   :  { %v814_v3 = vmul.f32 %v2231_v63, %v802_v60  ;;  %vm934_vm15 = vmor %vm932_vm14, %vm933_vm13  ;;  %vm820_vm1 = vweird.f32 %v2231_v63 }
 0xa2e   :  { %v929_v4 = vsub.f32 1.0, %v928_v2  ;;  %vm821_vm4 = vmor %vm819_vm3, %vm820_vm1 }
 0xa2f   :  { %v815_v7 = vmul.f32 %v2231_v63, %v814_v3 }
 0xa30   :  { %v930_v11 = vmul.f32 %v2229_v62, %v929_v4 }
 0xa31   :  { %v816_v13 = vmul.f32 0.5, %v815_v7 }
 0xa32   :  { %v931_v14 = vadd.f32 %v2229_v62, %v930_v11 }
 0xa33   :  { %v817_v17 = vsub.f32 1.5, %v816_v13 }
 0xa34   :  { %v935_v19 = vsel %vm934_vm15, %v2229_v62, %v931_v14 }
 0xa35   :  { %v940_v20 = vsel %vm937_vm2, %v939_v16, %v935_v19  ;;  %v818_v25 = vmul.f32 %v2231_v63, %v817_v17 }
 0xa36   :  { %v941_v26 = vmul.f32 %v940_v20, %v916_v18 }
 0xa37   :  { %v822_v28 = vsel %vm821_vm4, %v2231_v63, %v818_v25 }
 0xa38   :  { %v2064_v21 = vclamps-f32 %v941_v26, 1.0  ;;  %v824_v32 = vmul.f32 %v822_v28, %v2568_v15 }
 0xa3a   :  { %v984_v23 = vadd.f32 1.0, %v2064_v21  ;;  %v827_v35 = vmul.f32 %v825_v6, %v824_v32  ;;  %v2636_v32 = vld [vmem:[%s2896_s1 + $0x70] sm:$0xff] }
 0xa3b   :  { %1114 = vmatpush.msra.mxu0 %v2636_v32 }
 0xa3c   :  { %v986_v36 = vmul.f32 %v984_v23, %v893_v34  ;;  %v830_v0 = vadd.f32 %v828_v9, %v827_v35  ;;  %v2642_v34 = vld [vmem:[%s2896_s1 + $0x60] sm:$0xff] }
 0xa3d   :  { %1115 = vmatpush.msra.mxu0 %v2642_v34  ;;  %v2653_v23 = vld [vmem:[%s2896_s1 + $0x40] sm:$0xff] }
 0xa3e   :  { %2063 = vmatmul.msk.f32.gmra.mxu1 %vm41_vm0, %v830_v0  ;;  %2066 = vmatmul.msk.f32.vlgmr.msra.gmra.mxu2 %vm989_vm5, %v986_v36 }
 0xabb   :  { %v890_v22 = vpop.f32.mrf.mxu1 }
 0xabc   :  { %v891_v37 = vadd.f32 %v890_v22, %v831_v29 }
 0xabe   :  { %v903_v15 = vmul.f32 %v2574_v30, %v891_v37  ;;  %v894_v12 = vmul.f32 0.5, %v891_v37 }
 0xac0   :  { %v944_v38 = vmul.f32 %v903_v15, %v903_v15 }
 0xac1   :  { %v1013_v39 = vpop.f32.mrf.mxu2 }
 0xac2   :  { %v945_v6 = vmin.f32 %v944_v38, 16.0  ;;  %v1014_v41 = vadd.f32 %v1013_v39, %v988_v31  ;;  %v2661_v38 = vld [vmem:[%s2898_s3 + $0x8] sm:$0xff] }
 0xac4   :  { %v946_v56 = vmul.f32 2.1237322e-06, %v945_v6  ;;  %v957_v42 = vmul.f32 3.8918573e-05, %v945_v6  ;;  %v2620_v9 = vadd.f32 %v1014_v41, %v2528_v27  ;;  %v1089_v41 = vperm.slane %v2661_v38, 0 }
 0xac6   :  { %v947_v44 = vadd.f32 0.00028619796, %v946_v56  ;;  %v958_v45 = vadd.f32 0.001143296, %v957_v42  ;;  %v1045_v46 = vsel %vm41_vm0, %v2620_v9, 0.0 }
 0xac7   :  { %1046 = vadd.xlane.f32.xlu2 %v1045_v46 }
 0xac8   :  { %v948_v29 = vmul.f32 %v947_v44, %v945_v6  ;;  %v959_v47 = vmul.f32 %v958_v45, %v945_v6  ;;  %v1092_v44 = vperm.slane %v2661_v38, 1 }
 0xaca   :  { %v960_v24 = vadd.f32 0.014752088, %v959_v47  ;;  %v949_v48 = vadd.f32 0.0036580483, %v948_v29 }
 0xacc   :  { %v961_v40 = vmul.f32 %v960_v24, %v945_v6  ;;  %v950_v33 = vmul.f32 %v949_v48, %v945_v6 }
 0xace   :  { %v962_v49 = vadd.f32 0.112945676, %v961_v40  ;;  %v951_v52 = vadd.f32 0.05243302, %v950_v33 }
 0xad0   :  { %v963_v50 = vmul.f32 %v962_v49, %v945_v6  ;;  %v952_v27 = vmul.f32 %v951_v52, %v945_v6  ;;  %v1095_v49 = vperm.slane %v2661_v38, 2 }
 0xad2   :  { %v964_v51 = vadd.f32 0.4994258, %v963_v50  ;;  %v953_v54 = vadd.f32 0.18741608, %v952_v27 }
 0xad4   :  { %v965_v53 = vmul.f32 %v964_v51, %v945_v6  ;;  %v954_v57 = vmul.f32 %v953_v54, %v945_v6 }
 0xad6   :  { %v966_v1 = vadd.f32 1.0, %v965_v53  ;;  %v955_v62 = vadd.f32 1.1283791, %v954_v57 }
 0xad8   :  { %2232 = vrcp.f32 %v966_v1  ;;  %v978_v61 = vand.u32 2147483648, %v966_v1  ;;  %v976_v58 = vand.u32 2147483647, %v966_v1  ;;  %vm972_vm7 = vweird.f32 %v966_v1 }
 0xad9   :  { %v956_v4 = vmul.f32 %v955_v62, %v903_v15 }
 0xada   :  { %v979_v3 = vor.u32 1.1754944e-38, %v978_v61  ;;  %vm977_vm10 = vcmp.eq.f32.partialorder %v976_v58, 8.507059e+37 }
 0xade   :  { %v2233_v55 = vpop.eup %2232 }
 0xadf   :  { %v968_v59 = vmul.f32 %v2233_v55, %v966_v1  ;;  %vm973_vm6 = vweird.f32 %v2233_v55 }
 0xae0   :  { %vm974_vm9 = vmor %vm972_vm7, %vm973_vm6 }
 0xae1   :  { %v969_v60 = vsub.f32 1.0, %v968_v59 }
 0xae3   :  { %v970_v63 = vmul.f32 %v2233_v55, %v969_v60 }
 0xae5   :  { %v971_v2 = vadd.f32 %v2233_v55, %v970_v63 }
 0xae7   :  { %v975_v5 = vsel %vm974_vm9, %v2233_v55, %v971_v2 }
 0xae8   :  { %v980_v7 = vsel %vm977_vm10, %v979_v3, %v975_v5 }
 0xae9   :  { %v981_v8 = vmul.f32 %v980_v7, %v956_v4 }
 0xaeb   :  { %v2065_v11 = vclamps-f32 %v981_v8, 1.0 }
 0xaed   :  { %v985_v13 = vadd.f32 1.0, %v2065_v11 }
 0xaef   :  { %v987_v14 = vmul.f32 %v985_v13, %v894_v12 }
 0xaf1   :  { %2067 = vmatmul.msk.f32.gmra.mxu2 %vm989_vm5, %v987_v14 }
 0xb3a   :  { %v1047_v16 = vpop.xlane.xlu2 %1046 }
 0xb3b   :  { %v1051_v17 = vmul.f32 %v1047_v16, %v2360_v10 }
 0xb3d   :  { %v1053_v18 = vsub.f32 %v2620_v9, %v1051_v17 }
 0xb3f   :  { %v1055_v19 = vmul.f32 %v1053_v18, %v1053_v18 }
 0xb41   :  { %v1057_v20 = vsel %vm41_vm0, %v1055_v19, 0.0 }
 0xb42   :  { %1058 = vadd.xlane.f32.xlu1 %v1057_v20 }
 0xb74   :  { %v1016_v25 = vpop.f32.mrf.mxu2 }
 0xb75   :  { %v1017_v26 = vadd.f32 %v1016_v25, %v988_v31 }
 0xb77   :  { %v2629_v28 = vadd.f32 %v1017_v26, %v2550_v43  ;;  %v2648_v43 = vld [vmem:[%s2896_s1 + $0x50] sm:$0xff] }
 0xb78   :  { %1116 = vmatpush.msra.mxu0 %v2648_v43 }
 0xb79   :  { %v1048_v21 = vsel %vm41_vm0, %v2629_v28, 0.0 }
 0xb7a   :  { %1049 = vadd.xlane.f32.xlu0 %v1048_v21  ;;  %1117 = vmatpush.msra.mxu0 %v2653_v23 }
 0xbb5   :  { %v1059_v35 = vpop.xlane.xlu1 %1058 }
 0xbb6   :  { %v1063_v36 = vmul.f32 %v1059_v35, %v2360_v10 }
 0xbb8   :  { %v1065_v0 = vadd.f32 1e-12, %v1063_v36 }
 0xbba   :  { %2234 = vrsqrt.f32 %v1065_v0  ;;  %vm1073_vm12 = vweird.f32 %v1065_v0 }
 0xbc0   :  { %v2235_v22 = vpop.eup %2234 }
 0xbc1   :  { %v1068_v37 = vmul.f32 %v2235_v22, %v1065_v0  ;;  %vm1074_vm11 = vweird.f32 %v2235_v22 }
 0xbc2   :  { %vm1075_vm13 = vmor %vm1073_vm12, %vm1074_vm11 }
 0xbc3   :  { %v1069_v15 = vmul.f32 %v2235_v22, %v1068_v37 }
 0xbc5   :  { %v1070_v31 = vmul.f32 0.5, %v1069_v15 }
 0xbc7   :  { %v1071_v39 = vsub.f32 1.5, %v1070_v31 }
 0xbc9   :  { %v1072_v6 = vmul.f32 %v2235_v22, %v1071_v39 }
 0xbcb   :  { %v1076_v56 = vsel %vm1075_vm13, %v2235_v22, %v1072_v6 }
 0xbcc   :  { %v1087_v42 = vmul.f32 %v1076_v56, %v1053_v18 }
 0xbce   :  { %v1090_v45 = vmul.f32 %v1089_v41, %v1087_v42 }
 0xbd0   :  { %v1093_v46 = vadd.f32 %v1092_v44, %v1090_v45 }
 0xbd2   :  { %2089 = vmatmul.msk.f32.vlgmr.msra.gmra.mxu0 %vm41_vm0, %v1093_v46 }
 0xbed   :  { %v1050_v29 = vpop.xlane.xlu0 %1049 }
 0xbee   :  { %v1052_v47 = vmul.f32 %v1050_v29, %v2360_v10 }
 0xbf0   :  { %v1054_v24 = vsub.f32 %v2629_v28, %v1052_v47 }
 0xbf2   :  { %v1056_v48 = vmul.f32 %v1054_v24, %v1054_v24 }
 0xbf4   :  { %v1060_v40 = vsel %vm41_vm0, %v1056_v48, 0.0 }
 0xbf5   :  { %1061 = vadd.xlane.f32.xlu1 %v1060_v40 }
 0xc4f   :  { %v1119_v33 = vpop.f32.mrf.mxu0 }
 0xc50   :  { %v2670_v50 = vadd.f32 %v1119_v33, %v1095_v49 }
 0xc52   :  { %1255 = vrot.lane.b32.xlu2 %v2670_v50, %s2307_s30  ;;  %1257 = vrot.lane.b32.xlu1 %v2670_v50, %s2306_s29 }
 0xc53   :  { %1126 = vrot.lane.b32.xlu0 %v2670_v50, %s2305_s28 }
 0xc68   :  { %v1062_v51 = vpop.xlane.xlu1 %1061 }
 0xc69   :  { %v1064_v52 = vmul.f32 %v1062_v51, %v2360_v10 }
 0xc6b   :  { %v1066_v53 = vadd.f32 1e-12, %v1064_v52 }
 0xc6d   :  { %2236 = vrsqrt.f32 %v1066_v53  ;;  %vm1083_vm15 = vweird.f32 %v1066_v53 }
 0xc73   :  { %v2237_v1 = vpop.eup %2236 }
 0xc74   :  { %v1078_v27 = vmul.f32 %v2237_v1, %v1066_v53  ;;  %vm1084_vm14 = vweird.f32 %v2237_v1  ;;  %v2076_v53 = vld [vmem:[%s2897_s2 + $0x60] sm:$0xff] }
 0xc75   :  { %vm1085_vm1 = vmor %vm1083_vm15, %vm1084_vm14 }
 0xc76   :  { %v1079_v54 = vmul.f32 %v2237_v1, %v1078_v27 }
 0xc78   :  { %v1080_v55 = vmul.f32 0.5, %v1079_v54 }
 0xc7a   :  { %v1081_v57 = vsub.f32 1.5, %v1080_v55 }
 0xc7c   :  { %v1082_v59 = vmul.f32 %v2237_v1, %v1081_v57 }
 0xc7e   :  { %v1086_v60 = vsel %vm1085_vm1, %v2237_v1, %v1082_v59  ;;  %v2077_v1 = vld [vmem:[%s2897_s2 + $0x68] sm:$0xff] }
 0xc7f   :  { %v1088_v61 = vmul.f32 %v1086_v60, %v1054_v24 }
 0xc81   :  { %v1091_v62 = vmul.f32 %v1089_v41, %v1088_v61 }
 0xc83   :  { %v1094_v63 = vadd.f32 %v1092_v44, %v1091_v62 }
 0xc85   :  { %2090 = vmatmul.msk.f32.gmra.mxu0 %vm41_vm0, %v1094_v63 }
 0xcac   :  { %v1256_v3 = vpop.permute.xlu2 %1255 }
 0xcc4   :  { %v1258_v58 = vpop.permute.xlu1 %1257 }
 0xcc5   :  { %v1127_v2 = vpop.permute.xlu0 %1126 }
 0xcc6   :  { %2091 = vmatpush.xpose.msk.msra.mxu3 %vm132_vm8, %v1127_v2 }
 0xcc9   :  { %2092 = vmatmul.msk.f32.vlgmr.msra.gmra.mxu3 %vm132_vm8, %v2670_v50 }
 0xcca   :  { %2097 = vmatpush.xpose.msk.msrb.mxu3 %vm132_vm8, %v1258_v58 }
 0xcce   :  { %1408 = vmatpush.msra.mxu3 %v2077_v1 }
 0xcd1   :  { %2098 = vmatmul.msk.f32.vlgmr.msrb.gmra.mxu3 %vm132_vm8, %v1256_v3 }
 0xd02   :  { %v1122_v4 = vpop.f32.mrf.mxu0 }
 0xd03   :  { %v2685_v5 = vadd.f32 %v1122_v4, %v1095_v49 }
 0xd05   :  { %1153 = vrot.lane.b32.xlu0 %v2685_v5, %s2305_s28 }
 0xd4c   :  { %v1149_v7 = vpop.f32.mrf.mxu3 }
 0xd4d   :  { %v1179_v8 = vmul.f32 0.35355338, %v1149_v7 }
 0xd4f   :  { %v1181_v11 = vsel %vm132_vm8, %v1179_v8, -inf }
 0xd50   :  { %1182 = vmax.xlane.f32.xlu0 %v1181_v11 }
 0xd54   :  { %v1280_v12 = vpop.f32.mrf.mxu3 }
 0xd55   :  { %v1311_v13 = vmul.f32 0.35355338, %v1280_v12 }
 0xd57   :  { %v1313_v14 = vsel %vm132_vm8, %v1311_v13, -inf }
 0xd58   :  { %1314 = vmax.xlane.f32.xlu1 %v1313_v14 }
 0xd64   :  { %1285 = vrot.lane.b32.xlu0 %v2685_v5, %s2306_s29 }
 0xd71   :  { %1335 = vrot.lane.b32.xlu1 %v2670_v50, %s2310_s7 }
 0xd77   :  { %v1154_v16 = vpop.permute.xlu0 %1153 }
 0xd78   :  { %2093 = vmatpush.xpose.msk.msra.mxu1 %vm132_vm8, %v1154_v16 }
 0xd79   :  { %1445 = vrot.lane.b32.xlu1 %v2670_v50, %s2309_s6 }
 0xd7b   :  { %2094 = vmatmul.msk.f32.vlgmr.msra.gmra.mxu1 %vm132_vm8, %v2685_v5 }
 0xd81   :  { %1229 = vrot.lane.b32.xlu1 %v2685_v5, %s2308_s5 }
 0xdc3   :  { %v1183_v17 = vpop.xlane.xlu0 %1182 }
 0xdc4   :  { %v1187_v18 = vsub.f32 %v1179_v8, %v1183_v17 }
 0xdc6   :  { %v1189_v19 = vmul.f32 1.442695, %v1187_v18 }
 0xdc8   :  { %2238 = vpow2.f32 %v1189_v19 }
 0xdcb   :  { %v1315_v20 = vpop.xlane.xlu1 %1314 }
 0xdcc   :  { %v1319_v25 = vsub.f32 %v1311_v13, %v1315_v20 }
 0xdce   :  { %v2239_v26 = vpop.eup %2238  ;;  %v1321_v21 = vmul.f32 1.442695, %v1319_v25 }
 0xdcf   :  { %v1193_v35 = vsel %vm132_vm8, %v2239_v26, 0.0 }
 0xdd0   :  { %2240 = vpow2.f32 %v1321_v21  ;;  %1194 = vadd.xlane.f32.xlu2 %v1193_v35 }
 0xdd6   :  { %v2241_v36 = vpop.eup %2240  ;;  %v1286_v0 = vpop.permute.xlu0 %1285 }
 0xdd7   :  { %2099 = vmatpush.xpose.msk.msrb.mxu1 %vm132_vm8, %v1286_v0  ;;  %v1325_v22 = vsel %vm132_vm8, %v2241_v36, 0.0 }
 0xdd8   :  { %1326 = vadd.xlane.f32.xlu0 %v1325_v22 }
 0xddb   :  { %1437 = vmatpush.msra.mxu1 %v2076_v53 }
 0xde3   :  { %v1336_v37 = vpop.permute.xlu1 %1335 }
 0xde8   :  { %1203 = vrot.lane.b32.xlu2 %v2670_v50, %s2308_s5 }
 0xdeb   :  { %v1446_v15 = vpop.permute.xlu1 %1445 }
 0xdec   :  { %1447 = vrot.lane.b32.xlu0 %v2670_v50, %s2313_s12 }
 0xdf0   :  { %1283 = vrot.lane.b32.xlu2 %v2685_v5, %s2307_s30 }
 0xdf3   :  { %v1230_v31 = vpop.permute.xlu1 %1229 }
 0xdf4   :  { %1250 = vmatpush.msrb.mxu0 %v1230_v31 }
 0xdf8   :  { %v1176_v39 = vpop.f32.mrf.mxu1 }
 0xdf9   :  { %v1180_v6 = vmul.f32 0.35355338, %v1176_v39 }
 0xdfb   :  { %v1184_v41 = vsel %vm132_vm8, %v1180_v6, -inf }
 0xe19   :  { %1185 = vmax.xlane.f32.xlu2 %v1184_v41 }
 0xe43   :  { %v1195_v56 = vpop.xlane.xlu2 %1194 }
 0xe44   :  { %2242 = vrcp.f32 %v1195_v56 }
 0xe4a   :  { %v2243_v42 = vpop.eup %2242 }
 0xe4b   :  { %v1201_v44 = vmul.f32 %v2243_v42, %v2239_v26  ;;  %v1204_v45 = vpop.permute.xlu2 %1203  ;;  %v1327_v46 = vpop.xlane.xlu0 %1326 }
 0xe4c   :  { %2244 = vrcp.f32 %v1327_v46  ;;  %1224 = vmatpush.msrb.mxu2 %v1204_v45  ;;  %v2078_v46 = vld [vmem:[%s2897_s2 + $0x70] sm:$0xff] }
 0xe4d   :  { %2095 = vmatmul.msk.f32.vlgmr.msrb.gmra.mxu2 %vm132_vm8, %v1201_v44  ;;  %1598 = vmatpush.msrb.mxu3 %v2078_v46 }
 0xe4e   :  { %1356 = vmatpush.msra.mxu2 %v1336_v37 }
 0xe52   :  { %v2245_v29 = vpop.eup %2244 }
 0xe53   :  { %v1333_v47 = vmul.f32 %v2245_v29, %v2241_v36  ;;  %v1284_v24 = vpop.permute.xlu2 %1283 }
 0xe54   :  { %2100 = vmatmul.msk.f32.vlgmr.msrb.gmra.mxu1 %vm132_vm8, %v1284_v24 }
 0xe55   :  { %2101 = vmatmul.msk.f32.vlgmr.msra.gmra.mxu2 %vm132_vm8, %v1333_v47 }
 0xe5e   :  { %v1448_v48 = vpop.permute.xlu0 %1447 }
 0xe5f   :  { %2107 = vmatpush.xpose.msk.msrb.mxu2 %vm132_vm8, %v1448_v48 }
 0xe62   :  { %2108 = vmatmul.msk.f32.vlgmr.msrb.gmra.mxu2 %vm132_vm8, %v1446_v15 }
 0xe8c   :  { %v1186_v40 = vpop.xlane.xlu2 %1185 }
 0xe8d   :  { %v1188_v49 = vsub.f32 %v1180_v6, %v1186_v40 }
 0xe8f   :  { %v1191_v33 = vmul.f32 1.442695, %v1188_v49 }
 0xe91   :  { %2246 = vpow2.f32 %v1191_v33 }
 0xe97   :  { %v2247_v51 = vpop.eup %2246 }
 0xe98   :  { %v1196_v52 = vsel %vm132_vm8, %v2247_v51, 0.0 }
 0xe99   :  { %1197 = vadd.xlane.f32.xlu0 %v1196_v52 }
 0xead   :  { %1473 = vrot.lane.b32.xlu0 %v2685_v5, %s2309_s6 }
 0xed0   :  { %v1226_v27 = vpop.f32.mrf.mxu2 }
 0xed1   :  { %v1308_v54 = vpop.f32.mrf.mxu1  ;;  %2105 = vmatmul.msk.f32.vlgmr.msra.gmra.mxu1 %vm132_vm8, %v1226_v27 }
 0xed2   :  { %v1312_v55 = vmul.f32 0.35355338, %v1308_v54 }
 0xed4   :  { %v1316_v57 = vsel %vm132_vm8, %v1312_v55, -inf }
 0xed5   :  { %1317 = vmax.xlane.f32.xlu1 %v1316_v57 }
 0xed8   :  { %v1358_v59 = vpop.f32.mrf.mxu2 }
 0xed9   :  { %2103 = vmatmul.msk.f32.vlgmr.msra.gmra.mxu3 %vm132_vm8, %v1358_v59 }
 0xee5   :  { %v1470_v60 = vpop.f32.mrf.mxu2 }
 0xee6   :  { %v1501_v61 = vmul.f32 0.35355338, %v1470_v60 }
 0xee8   :  { %v1503_v62 = vsel %vm132_vm8, %v1501_v61, -inf }
 0xee9   :  { %1504 = vmax.xlane.f32.xlu2 %v1503_v62 }
 0xeee   :  { %1475 = vrot.lane.b32.xlu1 %v2685_v5, %s2313_s12 }
 0xef6   :  { %1610 = vrot.lane.b32.xlu1 %v2670_v50, %s2312_s11 }
 0xefe   :  { %1636 = vrot.lane.b32.xlu1 %v2685_v5, %s2311_s10 }
 0xf01   :  { %1361 = vrot.lane.b32.xlu2 %v2685_v5, %s2310_s7  ;;  %s2016_s7 = sshll.u32 %s2899_s4, 4  ;;  %s2017_s7 = int_to_ptr.hbm [resolvable:$true] %s2016_s7 }
 0xf09   :  { %1525 = vrot.lane.b32.xlu2 %v2670_v50, %s2315_s16 }
 0xf0c   :  { %v1198_v63 = vpop.xlane.xlu0 %1197 }
 0xf0d   :  { %2248 = vrcp.f32 %v1198_v63 }
 0xf11   :  { %1608 = vrot.lane.b32.xlu2 %v2670_v50, %s2311_s10  ;;  %s2319_s10 = smov 128  }
 0xf13   :  { %v2249_v58 = vpop.eup %2248 }
 0xf14   :  { %v1202_v2 = vmul.f32 %v2249_v58, %v2247_v51 }
 0xf16   :  { %2096 = vmatmul.msk.f32.vlgmr.msrb.gmra.mxu0 %vm132_vm8, %v1202_v2 }
 0xf1f   :  { %v1474_v35 = vpop.permute.xlu0 %1473 }
 0xf48   :  { %v1318_v3 = vpop.xlane.xlu1 %1317 }
 0xf49   :  { %v1320_v4 = vsub.f32 %v1312_v55, %v1318_v3 }
 0xf4b   :  { %v1323_v7 = vmul.f32 1.442695, %v1320_v4 }
 0xf4d   :  { %2250 = vpow2.f32 %v1323_v7 }
 0xf4e   :  { %v2756_v41 = vpop.f32.mrf.mxu1 }
 0xf53   :  { %v2251_v8 = vpop.eup %2250 }
 0xf54   :  { %v1328_v11 = vsel %vm132_vm8, %v2251_v8, 0.0 }
 0xf55   :  { %1329 = vadd.xlane.f32.xlu0 %v1328_v11 }
 0xf5c   :  { %v1505_v12 = vpop.xlane.xlu2 %1504 }
 0xf5d   :  { %v1509_v13 = vsub.f32 %v1501_v61, %v1505_v12 }
 0xf5f   :  { %v1511_v14 = vmul.f32 1.442695, %v1509_v13 }
 0xf60   :  { %v1476_v16 = vpop.permute.xlu1 %1475 }
 0xf61   :  { %2252 = vpow2.f32 %v1511_v14 }
 0xf64   :  { %v1362_v17 = vpop.permute.xlu2 %1361 }
 0xf65   :  { %1382 = vmatpush.msra.mxu0 %v1362_v17 }
 0xf67   :  { %2109 = vmatpush.xpose.msk.msrb.mxu0 %vm132_vm8, %v1476_v16  ;;  %v2253_v18 = vpop.eup %2252 }
 0xf68   :  { %v1611_v19 = vpop.permute.xlu1 %1610  ;;  %v1515_v20 = vsel %vm132_vm8, %v2253_v18, 0.0 }
 0xf69   :  { %1516 = vadd.xlane.f32.xlu0 %v1515_v20  ;;  %2115 = vmatpush.xpose.msk.msrb.mxu1 %vm132_vm8, %v1611_v19 }
 0xf6c   :  { %v1526_v25 = vpop.permute.xlu2 %1525 }
 0xf6d   :  { %1546 = vmatpush.msra.mxu2 %v1526_v25 }
 0xf70   :  { %v1637_v6 = vpop.permute.xlu1 %1636 }
 0xf74   :  { %v1609_v21 = vpop.permute.xlu2 %1608 }
 0xf7d   :  { %1638 = vrot.lane.b32.xlu0 %v2685_v5, %s2312_s11  ;;  %s2320_s11 = smov 8  }
 0xf93   :  { %v1252_v26 = vpop.f32.mrf.mxu0 }
 0xf94   :  { %2106 = vmatmul.msk.f32.gmra.mxu1 %vm132_vm8, %v1252_v26 }
 0xf9c   :  { %2116 = vmatmul.msk.f32.vlgmr.msrb.gmra.mxu1 %vm132_vm8, %v1609_v21  ;;  %v1410_v21 = vpop.f32.mrf.mxu3 }
 0xfc8   :  { %v1330_v36 = vpop.xlane.xlu0 %1329 }
 0xfc9   :  { %2254 = vrcp.f32 %v1330_v36 }
 0xfcf   :  { %v2255_v0 = vpop.eup %2254 }
 0xfd0   :  { %v1334_v22 = vmul.f32 %v2255_v0, %v2251_v8  ;;  %v1440_v0 = vadd.f32 %v2756_v41, %v1410_v21 }
 0xfd2   :  { %2102 = vmatmul.msk.f32.vlgmr.msra.gmra.mxu0 %vm132_vm8, %v1334_v22 }
 0xfda   :  { %2110 = vmatmul.msk.f32.vlgmr.msrb.gmra.mxu0 %vm132_vm8, %v1474_v35 }
 0xfdc   :  { %v1517_v37 = vpop.xlane.xlu0 %1516 }
 0xfdd   :  { %2256 = vrcp.f32 %v1517_v37  ;;  %v1771_v37 = vperm.slane %v2661_v38, 3 }
 0xfe3   :  { %v2257_v15 = vpop.eup %2256 }
 0xfe4   :  { %v1523_v31 = vmul.f32 %v2257_v15, %v2253_v18 }
 0xfe6   :  { %2111 = vmatmul.msk.f32.vlgmr.msra.gmra.mxu2 %vm132_vm8, %v1523_v31 }
 0xfef   :  { %v1639_v39 = vpop.permute.xlu0 %1638 }
 0xff0   :  { %2117 = vmatpush.xpose.msk.msrb.mxu2 %vm132_vm8, %v1639_v39 }
 0xff3   :  { %2118 = vmatmul.msk.f32.vlgmr.msrb.gmra.mxu2 %vm132_vm8, %v1637_v6 }
0x1011   :  { %v2758_v56 = vpop.f32.mrf.mxu1 }
0x1019   :  { %v1633_v42 = vpop.f32.mrf.mxu1 }
0x101a   :  { %v1664_v44 = vmul.f32 0.35355338, %v1633_v42 }
0x101c   :  { %v1666_v45 = vsel %vm132_vm8, %v1664_v44, -inf }
0x101d   :  { %1667 = vmax.xlane.f32.xlu2 %v1666_v45 }
0x104f   :  { %v1384_v29 = vpop.f32.mrf.mxu0 }
0x1050   :  { %2104 = vmatmul.msk.f32.gmra.mxu3 %vm132_vm8, %v1384_v29 }
0x1057   :  { %v1498_v47 = vpop.f32.mrf.mxu0 }
0x1058   :  { %v1502_v24 = vmul.f32 0.35355338, %v1498_v47 }
0x105a   :  { %v1506_v48 = vsel %vm132_vm8, %v1502_v24, -inf }
0x105b   :  { %1507 = vmax.xlane.f32.xlu0 %v1506_v48 }
0x1069   :  { %v1548_v40 = vpop.f32.mrf.mxu2 }
0x106a   :  { %2113 = vmatmul.msk.f32.vlgmr.msrb.gmra.mxu3 %vm132_vm8, %v1548_v40 }
0x1076   :  { %v1661_v49 = vpop.f32.mrf.mxu2 }
0x1077   :  { %v1665_v33 = vmul.f32 0.35355338, %v1661_v49 }
0x1079   :  { %v1669_v51 = vsel %vm132_vm8, %v1665_v33, -inf }
0x107a   :  { %1670 = vmax.xlane.f32.xlu1 %v1669_v51 }
0x1090   :  { %v1668_v52 = vpop.xlane.xlu2 %1667 }
0x1091   :  { %v1672_v53 = vsub.f32 %v1664_v44, %v1668_v52 }
0x1093   :  { %v1674_v1 = vmul.f32 1.442695, %v1672_v53  ;;  %1551 = vrot.lane.b32.xlu1 %v2685_v5, %s2315_s16 }
0x1095   :  { %2258 = vpow2.f32 %v1674_v1  ;;  %v2075_v1 = vld [vmem:[%s2896_s1 + $0x78] sm:$0xff] }
0x109b   :  { %v2259_v27 = vpop.eup %2258 }
0x109c   :  { %v1678_v54 = vsel %vm132_vm8, %v2259_v27, 0.0 }
0x109d   :  { %1679 = vadd.xlane.f32.xlu2 %v1678_v54 }
0x10b5   :  { %1688 = vrot.lane.b32.xlu2 %v2670_v50, %s2314_s15 }
0x10ce   :  { %v1508_v55 = vpop.xlane.xlu0 %1507 }
0x10cf   :  { %v1510_v57 = vsub.f32 %v1502_v24, %v1508_v55 }
0x10d1   :  { %v1513_v59 = vmul.f32 1.442695, %v1510_v57 }
0x10d3   :  { %2260 = vpow2.f32 %v1513_v59  ;;  %v1413_v35 = vpop.f32.mrf.mxu3 }
0x10d4   :  { %v1443_v45 = vadd.f32 %v2758_v56, %v1413_v35  ;;  %v2073_v56 = vld [vmem:[%s2896_s1 + $0x68] sm:$0xff] }
0x10d9   :  { %v2261_v60 = vpop.eup %2260 }
0x10da   :  { %v1518_v61 = vsel %vm132_vm8, %v2261_v60, 0.0 }
0x10db   :  { %1519 = vadd.xlane.f32.xlu0 %v1518_v61 }
0x10ed   :  { %v1671_v62 = vpop.xlane.xlu1 %1670  ;;  %v1600_v36 = vpop.f32.mrf.mxu3 }
0x10ee   :  { %v1673_v63 = vsub.f32 %v1665_v33, %v1671_v62  ;;  %v1606_v22 = vadd.f32 %v1600_v36, %v1440_v0  ;;  %v1820_v0 = vperm.slane %v2661_v38, 4 }
0x10f0   :  { %v1676_v58 = vmul.f32 1.442695, %v1673_v63 }
0x10f2   :  { %2262 = vpow2.f32 %v1676_v58 }
0x10f8   :  { %v2263_v2 = vpop.eup %2262 }
0x10f9   :  { %v1681_v3 = vsel %vm132_vm8, %v2263_v2, 0.0 }
0x10fa   :  { %1682 = vadd.xlane.f32.xlu0 %v1681_v3 }
0x1105   :  { %v1552_v4 = vpop.permute.xlu1 %1551 }
0x1106   :  { %1572 = vmatpush.msra.mxu0 %v1552_v4 }
0x110e   :  { %1714 = vrot.lane.b32.xlu0 %v2685_v5, %s2314_s15  ;;  %v2079_v5 = vld [vmem:[%s2897_s2 + $0x78] sm:$0xff] }
0x110f   :  { %1761 = vmatpush.msra.mxu2 %v2079_v5 }
0x1110   :  { %v1680_v50 = vpop.xlane.xlu2 %1679 }
0x1118   :  { %v1689_v7 = vpop.permute.xlu2 %1688 }
0x1119   :  { %1709 = vmatpush.msrb.mxu0 %v1689_v7 }
0x114e   :  { %v1520_v8 = vpop.xlane.xlu0 %1519 }
0x114f   :  { %2264 = vrcp.f32 %v1520_v8 }
0x1150   :  { %2266 = vrcp.f32 %v1680_v50 }
0x1155   :  { %v2265_v11 = vpop.eup %2264 }
0x1156   :  { %v1524_v12 = vmul.f32 %v2265_v11, %v2261_v60  ;;  %v2267_v13 = vpop.eup %2266 }
0x1157   :  { %v1686_v14 = vmul.f32 %v2267_v13, %v2259_v27  ;;  %v2166_v27 = vpack.i.bf16 %v2075_v1, %v2636_v32  ;;  %v2071_v32 = vld [vmem:[%s2896_s1 + $0x58] sm:$0xff] }
0x1158   :  { %2112 = vmatmul.msk.f32.vlgmr.msra.gmra.mxu0 %vm132_vm8, %v1524_v12  ;;  %v2176_v60 = vpack.i.bf16 %v2071_v32, %v2648_v43  ;;  %v2087_v1 = vld [vmem:[%s2897_s2 + $0xb8] sm:$0xff] }
0x1159   :  { %1991 = vmatpush.msra.mxu3 %v2087_v1 }
0x1160   :  { %2119 = vmatmul.msk.f32.vlgmr.msrb.gmra.mxu0 %vm132_vm8, %v1686_v14 }
0x116d   :  { %v1683_v16 = vpop.xlane.xlu0 %1682 }
0x116e   :  { %2268 = vrcp.f32 %v1683_v16 }
0x1174   :  { %v2269_v17 = vpop.eup %2268 }
0x1175   :  { %v1687_v18 = vmul.f32 %v2269_v17, %v2263_v2 }
0x1180   :  { %v1715_v19 = vpop.permute.xlu0 %1714 }
0x1181   :  { %1735 = vmatpush.msra.mxu1 %v1715_v19 }
0x1182   :  { %2120 = vmatmul.msk.f32.vlgmr.msra.gmra.mxu1 %vm132_vm8, %v1687_v18 }
0x11d5   :  { %v1574_v20 = vpop.f32.mrf.mxu0 }
0x11d6   :  { %2114 = vmatmul.msk.f32.gmra.mxu3 %vm132_vm8, %v1574_v20 }
0x11dd   :  { %v1711_v25 = vpop.f32.mrf.mxu0 }
0x11de   :  { %2121 = vmatmul.msk.f32.vlgmr.msra.gmra.mxu2 %vm132_vm8, %v1711_v25 }
0x11ff   :  { %v1737_v26 = vpop.f32.mrf.mxu1 }
0x1200   :  { %2122 = vmatmul.msk.f32.gmra.mxu2 %vm132_vm8, %v1737_v26 }
0x1259   :  { %v1603_v44 = vpop.f32.mrf.mxu3 }
0x125a   :  { %v1607_v46 = vadd.f32 %v1603_v44, %v1443_v45  ;;  %v1823_v45 = vperm.slane %v2661_v38, 5 }
0x1261   :  { %v1763_v15 = vpop.f32.mrf.mxu2 }
0x1262   :  { %v1769_v31 = vadd.f32 %v1763_v15, %v1606_v22 }
0x1264   :  { %v1772_v39 = vadd.f32 %v1771_v37, %v1769_v31 }
0x1266   :  { %v2789_v6 = vadd.f32 %v1772_v39, %v2620_v9 }
0x1268   :  { %v1776_v42 = vsel %vm41_vm0, %v2789_v6, 0.0 }
0x1269   :  { %1777 = vadd.xlane.f32.xlu1 %v1776_v42 }
0x1283   :  { %v1766_v29 = vpop.f32.mrf.mxu2 }
0x1284   :  { %v1770_v47 = vadd.f32 %v1766_v29, %v1607_v46 }
0x1286   :  { %v1773_v41 = vadd.f32 %v1771_v37, %v1770_v47 }
0x1288   :  { %v2795_v24 = vadd.f32 %v1773_v41, %v2629_v28  ;;  %v2171_v28 = vpack.i.bf16 %v2073_v56, %v2642_v34  ;;  %v2069_v34 = vld [vmem:[%s2896_s1 + $0x48] sm:$0xff] }
0x1289   :  { %v2181_v59 = vpack.i.bf16 %v2069_v34, %v2653_v23 }
0x128a   :  { %v1779_v48 = vsel %vm41_vm0, %v2795_v24, 0.0 }
0x128b   :  { %1780 = vadd.xlane.f32.xlu2 %v1779_v48 }
0x12a3   :  { %2167 = vrot.lane.b32.xlu2 %v2166_v27, %s2316_s22 }
0x12ab   :  { %2182 = vrot.lane.b32.xlu2 %v2181_v59, %s2316_s22 }
0x12dc   :  { %v1778_v9 = vpop.xlane.xlu1 %1777 }
0x12dd   :  { %v1782_v40 = vmul.f32 %v1778_v9, %v2360_v10 }
0x12df   :  { %v1784_v49 = vsub.f32 %v2789_v6, %v1782_v40 }
0x12e1   :  { %v1786_v33 = vmul.f32 %v1784_v49, %v1784_v49 }
0x12e3   :  { %v1788_v51 = vsel %vm41_vm0, %v1786_v33, 0.0 }
0x12e4   :  { %1789 = vadd.xlane.f32.xlu0 %v1788_v51 }
0x12f8   :  { %2172 = vrot.lane.b32.xlu0 %v2171_v28, %s2316_s22 }
0x12fe   :  { %v1781_v52 = vpop.xlane.xlu2 %1780 }
0x12ff   :  { %v1783_v53 = vmul.f32 %v1781_v52, %v2360_v10 }
0x1301   :  { %v2813_v54 = vsub.f32 %v2795_v24, %v1783_v53 }
0x1303   :  { %v1787_v55 = vmul.f32 %v2813_v54, %v2813_v54 }
0x1305   :  { %v1791_v57 = vsel %vm41_vm0, %v1787_v55, 0.0  ;;  %v2086_v55 = vld [vmem:[%s2897_s2 + $0xb0] sm:$0xff] }
0x1306   :  { %1792 = vadd.xlane.f32.xlu1 %v1791_v57  ;;  %v2168_v58 = vpop.permute.xlu2 %2167  ;;  %1992 = vmatpush.msra.mxu3 %v2086_v55 }
0x1307   :  { %v2170_v2 = vunpack.i.h.bf16 %v2168_v58  ;;  %v2169_v3 = vunpack.i.l.bf16 %v2168_v58  ;;  %v2084_v58 = vld [vmem:[%s2897_s2 + $0xa0] sm:$0xff] }
0x1309   :  { %v1854_v4 = vsel %vm41_vm0, %v2169_v3, %v2170_v2 }
0x130a   :  { %1877 = vmatpush.msra.mxu0 %v1854_v4 }
0x130e   :  { %v2183_v36 = vpop.permute.xlu2 %2182 }
0x130f   :  { %v2185_v37 = vunpack.i.h.bf16 %v2183_v36  ;;  %v2184_v15 = vunpack.i.l.bf16 %v2183_v36 }
0x1311   :  { %v1851_v47 = vsel %vm41_vm0, %v2184_v15, %v2185_v37 }
0x131f   :  { %2177 = vrot.lane.b32.xlu1 %v2176_v60, %s2316_s22  ;;  %v2085_v60 = vld [vmem:[%s2897_s2 + $0xa8] sm:$0xff] }
0x1320   :  { %1993 = vmatpush.msra.mxu3 %v2085_v60 }
0x1322   :  { %1994 = vmatpush.msra.mxu3 %v2084_v58 }
0x1357   :  { %v1790_v61 = vpop.xlane.xlu0 %1789 }
0x1358   :  { %v1794_v62 = vmul.f32 %v1790_v61, %v2360_v10 }
0x135a   :  { %v1796_v63 = vadd.f32 1e-12, %v1794_v62 }
0x135c   :  { %2270 = vrsqrt.f32 %v1796_v63  ;;  %vm1804_vm2 = vweird.f32 %v1796_v63 }
0x1362   :  { %v2271_v43 = vpop.eup %2270 }
0x1363   :  { %v1799_v11 = vmul.f32 %v2271_v43, %v1796_v63  ;;  %vm1805_vm8 = vweird.f32 %v2271_v43 }
0x1364   :  { %vm1806_vm3 = vmor %vm1804_vm2, %vm1805_vm8 }
0x1365   :  { %v1800_v14 = vmul.f32 %v2271_v43, %v1799_v11 }
0x1367   :  { %v1801_v17 = vmul.f32 0.5, %v1800_v14  ;;  %v2081_v14 = vld [vmem:[%s2897_s2 + $0x88] sm:$0xff] }
0x1369   :  { %v1802_v18 = vsub.f32 1.5, %v1801_v17 }
0x136a   :  { %v2173_v23 = vpop.permute.xlu0 %2172 }
0x136b   :  { %v2175_v50 = vunpack.i.h.bf16 %v2173_v23  ;;  %v2174_v7 = vunpack.i.l.bf16 %v2173_v23  ;;  %v1803_v20 = vmul.f32 %v2271_v43, %v1802_v18  ;;  %v2083_v23 = vld [vmem:[%s2897_s2 + $0x98] sm:$0xff] }
0x136c   :  { %1995 = vmatpush.msra.mxu3 %v2083_v23 }
0x136d   :  { %v1853_v8 = vsel %vm41_vm0, %v2174_v7, %v2175_v50  ;;  %v1807_v21 = vsel %vm1806_vm3, %v2271_v43, %v1803_v20 }
0x136e   :  { %1878 = vmatpush.msra.mxu0 %v1853_v8  ;;  %v1818_v22 = vmul.f32 %v1807_v21, %v1784_v49  ;;  %v1826_v49 = vperm.slane %v2661_v38, 6  ;;  %v2082_v8 = vld [vmem:[%s2897_s2 + $0x90] sm:$0xff] }
0x136f   :  { %1996 = vmatpush.msra.mxu3 %v2082_v8 }
0x1370   :  { %v1821_v39 = vmul.f32 %v1820_v0, %v1818_v22 }
0x1371   :  { %1997 = vmatpush.msra.mxu3 %v2081_v14 }
0x1372   :  { %v1824_v41 = vadd.f32 %v1823_v45, %v1821_v39 }
0x1379   :  { %v1793_v12 = vpop.xlane.xlu1 %1792 }
0x137a   :  { %v1795_v13 = vmul.f32 %v1793_v12, %v2360_v10 }
0x137c   :  { %v1797_v16 = vadd.f32 1e-12, %v1795_v13 }
0x137e   :  { %2272 = vrsqrt.f32 %v1797_v16  ;;  %vm1814_vm6 = vweird.f32 %v1797_v16 }
0x1384   :  { %v2273_v19 = vpop.eup %2272 }
0x1385   :  { %v1809_v5 = vmul.f32 %v2273_v19, %v1797_v16  ;;  %vm1815_vm4 = vweird.f32 %v2273_v19 }
0x1386   :  { %vm1816_vm7 = vmor %vm1814_vm6, %vm1815_vm4 }
0x1387   :  { %v1810_v25 = vmul.f32 %v2273_v19, %v1809_v5 }
0x1389   :  { %v1811_v26 = vmul.f32 0.5, %v1810_v25 }
0x138b   :  { %v1812_v35 = vsub.f32 1.5, %v1811_v26 }
0x138d   :  { %v1813_v10 = vmul.f32 %v2273_v19, %v1812_v35 }
0x138f   :  { %v1817_v46 = vsel %vm1816_vm7, %v2273_v19, %v1813_v10  ;;  %v2080_v19 = vld [vmem:[%s2897_s2 + $0x80] sm:$0xff]  ;;  %s2318_s2 = smov [#allocation2]  }
0x1390   :  { %v1819_v48 = vmul.f32 %v1817_v46, %v2813_v54  ;;  %1998 = vmatpush.msra.mxu3 %v2080_v19  ;;  %s2014_s30 = sshll.u32 %s2318_s2, 4  ;;  %s2015_s30 = int_to_ptr.vmem [resolvable:$true] %s2014_s30 }
0x1391   :  { %v2178_v31 = vpop.permute.xlu1 %2177 }
0x1392   :  { %v2180_v42 = vunpack.i.h.bf16 %v2178_v31  ;;  %v2179_v44 = vunpack.i.l.bf16 %v2178_v31  ;;  %v1822_v9 = vmul.f32 %v1820_v0, %v1819_v48 }
0x1394   :  { %v1852_v29 = vsel %vm41_vm0, %v2179_v44, %v2180_v42  ;;  %v1825_v40 = vadd.f32 %v1823_v45, %v1822_v9 }
0x1395   :  { %1879 = vmatpush.msra.mxu0 %v1852_v29 }
0x1397   :  { %1880 = vmatpush.msra.mxu0 %v1851_v47 }
0x1398   :  { %2123 = vmatmul.msk.f32.vlgmr.msra.gmra.mxu0 %vm41_vm0, %v1824_v41 }
0x13a0   :  { %2124 = vmatmul.msk.f32.gmra.mxu0 %vm41_vm0, %v1825_v40 }
0x1415   :  { %v1882_v33 = vpop.f32.mrf.mxu0 }
0x1416   :  { %v2841_v51 = vadd.f32 %v1882_v33, %v1826_v49 }
0x1418   :  { %v2845_v56 = vmul.f32 %v2841_v51, %v2574_v30 }
0x141a   :  { %v1892_v28 = vmul.f32 %v2845_v56, %v2845_v56 }
0x141c   :  { %v1893_v52 = vmin.f32 %v1892_v28, 16.0 }
0x141d   :  { %v1885_v53 = vpop.f32.mrf.mxu0 }
0x141e   :  { %v1894_v27 = vmul.f32 2.1237322e-06, %v1893_v52  ;;  %v1905_v54 = vmul.f32 3.8918573e-05, %v1893_v52  ;;  %v2852_v34 = vadd.f32 %v1885_v53, %v1826_v49 }
0x1420   :  { %v1895_v57 = vadd.f32 0.00028619796, %v1894_v27  ;;  %v1906_v59 = vadd.f32 0.001143296, %v1905_v54  ;;  %v2859_v32 = vmul.f32 %v2852_v34, %v2574_v30 }
0x1422   :  { %v1896_v61 = vmul.f32 %v1895_v57, %v1893_v52  ;;  %v1907_v62 = vmul.f32 %v1906_v59, %v1893_v52  ;;  %v1932_v63 = vmul.f32 %v2859_v32, %v2859_v32 }
0x1424   :  { %v1908_v2 = vadd.f32 0.014752088, %v1907_v62  ;;  %v1933_v3 = vmin.f32 %v1932_v63, 16.0  ;;  %v1897_v30 = vadd.f32 0.0036580483, %v1896_v61 }
0x1426   :  { %v1909_v4 = vmul.f32 %v1908_v2, %v1893_v52  ;;  %v1934_v50 = vmul.f32 2.1237322e-06, %v1933_v3  ;;  %v1945_v7 = vmul.f32 3.8918573e-05, %v1933_v3  ;;  %v1898_v12 = vmul.f32 %v1897_v30, %v1893_v52 }
0x1427   :  { %v1888_v30 = vmul.f32 0.5, %v2841_v51  ;;  %v1976_v51 = vperm.slane %v2661_v38, 7 }
0x1428   :  { %v1910_v43 = vadd.f32 0.112945676, %v1909_v4  ;;  %v1935_v11 = vadd.f32 0.00028619796, %v1934_v50  ;;  %v1946_v13 = vadd.f32 0.001143296, %v1945_v7 }
0x1429   :  { %v1899_v20 = vadd.f32 0.05243302, %v1898_v12  ;;  %v1889_v12 = vmul.f32 0.5, %v2852_v34 }
0x142a   :  { %v1911_v16 = vmul.f32 %v1910_v43, %v1893_v52  ;;  %v1936_v17 = vmul.f32 %v1935_v11, %v1933_v3  ;;  %v1947_v18 = vmul.f32 %v1946_v13, %v1933_v3 }
0x142b   :  { %v1900_v0 = vmul.f32 %v1899_v20, %v1893_v52 }
0x142c   :  { %v1912_v5 = vadd.f32 0.4994258, %v1911_v16  ;;  %v1948_v25 = vadd.f32 0.014752088, %v1947_v18  ;;  %v1937_v21 = vadd.f32 0.0036580483, %v1936_v17 }
0x142d   :  { %v1901_v15 = vadd.f32 0.18741608, %v1900_v0 }
0x142e   :  { %v1913_v26 = vmul.f32 %v1912_v5, %v1893_v52  ;;  %v1949_v35 = vmul.f32 %v1948_v25, %v1933_v3  ;;  %v1938_v10 = vmul.f32 %v1937_v21, %v1933_v3 }
0x142f   :  { %v1902_v45 = vmul.f32 %v1901_v15, %v1893_v52 }
0x1430   :  { %v1914_v36 = vadd.f32 1.0, %v1913_v26  ;;  %v1950_v22 = vadd.f32 0.112945676, %v1949_v35  ;;  %v1939_v39 = vadd.f32 0.05243302, %v1938_v10 }
0x1431   :  { %v1903_v9 = vadd.f32 1.1283791, %v1902_v45 }
0x1432   :  { %2274 = vrcp.f32 %v1914_v36  ;;  %v1951_v37 = vmul.f32 %v1950_v22, %v1933_v3  ;;  %v1940_v47 = vmul.f32 %v1939_v39, %v1933_v3  ;;  %v1926_v48 = vand.u32 2147483648, %v1914_v36 }
0x1433   :  { %v1924_v49 = vand.u32 2147483647, %v1914_v36  ;;  %vm1920_vm10 = vweird.f32 %v1914_v36  ;;  %v1904_v27 = vmul.f32 %v1903_v9, %v2845_v56 }
0x1434   :  { %v1952_v31 = vadd.f32 0.4994258, %v1951_v37  ;;  %v1941_v33 = vadd.f32 0.18741608, %v1940_v47  ;;  %v1927_v53 = vor.u32 1.1754944e-38, %v1926_v48 }
0x1435   :  { %vm1925_vm12 = vcmp.eq.f32.partialorder %v1924_v49, 8.507059e+37 }
0x1436   :  { %v1953_v42 = vmul.f32 %v1952_v31, %v1933_v3  ;;  %v1942_v55 = vmul.f32 %v1941_v33, %v1933_v3 }
0x1438   :  { %v2275_v44 = vpop.eup %2274  ;;  %v1954_v29 = vadd.f32 1.0, %v1953_v42  ;;  %v1943_v63 = vadd.f32 1.1283791, %v1942_v55 }
0x1439   :  { %v1916_v46 = vmul.f32 %v2275_v44, %v1914_v36  ;;  %vm1921_vm9 = vweird.f32 %v2275_v44 }
0x143a   :  { %2276 = vrcp.f32 %v1954_v29  ;;  %vm1922_vm11 = vmor %vm1920_vm10, %vm1921_vm9  ;;  %v1966_v62 = vand.u32 2147483648, %v1954_v29  ;;  %v1964_v2 = vand.u32 2147483647, %v1954_v29  ;;  %vm1960_vm14 = vweird.f32 %v1954_v29 }
0x143b   :  { %v1917_v41 = vsub.f32 1.0, %v1916_v46  ;;  %v1944_v7 = vmul.f32 %v1943_v63, %v2859_v32 }
0x143c   :  { %v1967_v56 = vor.u32 1.1754944e-38, %v1966_v62  ;;  %vm1965_vm1 = vcmp.eq.f32.partialorder %v1964_v2, 8.507059e+37 }
0x143d   :  { %v1918_v40 = vmul.f32 %v2275_v44, %v1917_v41 }
0x143f   :  { %v1919_v28 = vadd.f32 %v2275_v44, %v1918_v40 }
0x1440   :  { %v2277_v1 = vpop.eup %2276 }
0x1441   :  { %v1923_v54 = vsel %vm1922_vm11, %v2275_v44, %v1919_v28  ;;  %v1956_v57 = vmul.f32 %v2277_v1, %v1954_v29  ;;  %vm1961_vm13 = vweird.f32 %v2277_v1 }
0x1442   :  { %v1928_v52 = vsel %vm1925_vm12, %v1927_v53, %v1923_v54  ;;  %vm1962_vm15 = vmor %vm1960_vm14, %vm1961_vm13 }
0x1443   :  { %v1929_v59 = vmul.f32 %v1928_v52, %v1904_v27  ;;  %v1957_v60 = vsub.f32 1.0, %v1956_v57 }
0x1445   :  { %v2125_v61 = vclamps-f32 %v1929_v59, 1.0  ;;  %v1958_v58 = vmul.f32 %v2277_v1, %v1957_v60 }
0x1447   :  { %v1972_v23 = vadd.f32 1.0, %v2125_v61  ;;  %v1959_v4 = vadd.f32 %v2277_v1, %v1958_v58 }
0x1449   :  { %v1974_v50 = vmul.f32 %v1972_v23, %v1888_v30  ;;  %v1963_v3 = vsel %vm1962_vm15, %v2277_v1, %v1959_v4 }
0x144a   :  { %v1968_v8 = vsel %vm1965_vm1, %v1967_v56, %v1963_v3 }
0x144b   :  { %2127 = vmatmul.msk.f32.vlgmr.msra.gmra.mxu3 %vm989_vm5, %v1974_v50  ;;  %v1969_v43 = vmul.f32 %v1968_v8, %v1944_v7 }
0x144d   :  { %v2126_v11 = vclamps-f32 %v1969_v43, 1.0 }
0x144f   :  { %v1973_v13 = vadd.f32 1.0, %v2126_v11 }
0x1451   :  { %v1975_v14 = vmul.f32 %v1973_v13, %v1889_v12 }
0x1453   :  { %2128 = vmatmul.msk.f32.gmra.mxu3 %vm989_vm5, %v1975_v14 }
0x14ce   :  { %v2000_v16 = vpop.f32.mrf.mxu3 }
0x14cf   :  { %v2001_v17 = vadd.f32 %v2000_v16, %v1976_v51 }
0x14d1   :  { %v2006_v18 = vadd.f32 %v2001_v17, %v2789_v6 }
0x14d3   :  { %2008 = vst.msk [vmem:[#allocation2] sm:$0xff] %vm41_vm0, %v2006_v18 }
0x14d6   :  { %v2003_v32 = vpop.f32.mrf.mxu3 }
0x14d7   :  { %v2004_v34 = vadd.f32 %v2003_v32, %v1976_v51 }
0x14d9   :  { %v2007_v19 = vadd.f32 %v2004_v34, %v2795_v24 }
0x14db   :  { %2009 = vst.msk [vmem:[#allocation2 + $0x8] sm:$0xff] %vm41_vm0, %v2007_v19 }
0x14dc   :  { %2022 = dma.vmem_to_hbm [thread:$0]  %s2015_s30, 256, %s2017_s7, [#allocation3], %s2319_s10, %s2319_s10, %s2320_s11  }
0x14dd   :  { %2302 = dma.done.wait [#allocation3], 256  }
0x14de   :  { %2303 = vsyncadd [#allocation3], 4294967040 }
0x14df   :  { %2027 = vsyncpa [#allocation3], 1 }

</bundles_post_ra>
